<compile_context>
chip_gen: v5e
topology: v5e:2x2
jax: 0.10.0
libtpu: 0.0.40
codegen_flags: <defaults>
</compile_context>

<pallas_src>
import functools
import math

import numpy as np
import jax
import jax.numpy as jnp
from jax import lax
from jax.experimental import pallas as pl
from jax.experimental.pallas import tpu as pltpu


def _round_up(n, m):
    return ((n + m - 1) // m) * m


# ----------------------------------------------------------------------------- GELU helpers
def _make_gelu(use_erf: bool):
    if use_erf:
        inv_sqrt2 = 1.0 / math.sqrt(2.0)
        return lambda v: 0.5 * v * (1.0 + lax.erf(v * inv_sqrt2))
    # TODO(synk): exact erf-GELU (nn.GELU() default) fallback: tanh approximation (~1e-3 off).
    c = math.sqrt(2.0 / math.pi)
    return lambda v: 0.5 * v * (1.0 + jnp.tanh(c * (v + 0.044715 * v * v * v)))


def _erf_lowers_in_pallas() -> bool:
    """Probe whether lax.erf lowers inside a Pallas TPU kernel on this jax version."""
    def k(x_ref, o_ref):
        o_ref[...] = lax.erf(x_ref[...])
    try:
        fn = pl.pallas_call(k, out_shape=jax.ShapeDtypeStruct((8, 128), jnp.float32))
        jax.jit(fn).lower(jnp.zeros((8, 128), jnp.float32)).compile()
        return True
    except Exception:
        return False


def _default_vmem_limit_bytes() -> int:
    """~80% of physical VMEM, capped at 112 MiB (high for v5e/v6e, ~51 MiB on v7x)."""
    try:
        cap = int(pltpu.get_tpu_info().vmem_capacity_bytes)
        return min(int(cap * 0.8), 112 * 1024 * 1024)
    except Exception:
        return 48 * 1024 * 1024


# ----------------------------------------------------------------------------- Pallas kernel
def _inception_conv_kernel(x_ref, w1_ref, b1_ref, w2_ref, b2_ref, mask_ref,
                           o_ref, xcol_ref, midcol_ref, *,
                           K, P, Wp, head, span_al, row_tile, gelu):
    # x_ref     : (block_rows, Cin)        zero-padded, row-major flattened NHWC input
    # w1_ref    : (K, K*Cin, Cff)          per-dh conv1 weights (dw folded into contraction)
    # b1_ref    : (1, Cff) f32
    # w2_ref    : (K, K*Cff, Cin)          per-dh conv2 weights
    # b2_ref    : (1, Cin) f32
    # mask_ref  : (span_al, 1) f32         1.0 at interior positions, 0.0 at halo/alignment
    # o_ref     : (block_rows, Cin)        output (compute dtype); halo rows left untouched
    # xcol_ref  : VMEM (block_rows, K*Cin) W-direction im2col of the input
    # midcol_ref: VMEM (block_rows, K*Cff) W-direction im2col of GELU(conv1)
    cin = x_ref.shape[1]
    cff = w1_ref.shape[2]
    cout = w2_ref.shape[2]
    kcff = K * cff
    rows_total = x_ref.shape[0]

    b1 = b1_ref[...]
    b2 = b2_ref[...]

    # ---- W-direction im2col of the input block: xcol[r, dw] = x[r + dw - P] ----------------
    # Only the two dw=+-1 copies are row-misaligned; all later conv1 loads are aligned.
    for dw in range(K):
        d = dw - P
        lo_d, hi_d = max(0, -d), rows_total - max(0, d)
        lo_s, hi_s = max(0, d), rows_total - max(0, -d)
        xcol_ref[lo_d:hi_d, dw * cin:(dw + 1) * cin] = x_ref[lo_s:hi_s, :]

    # ---- zero only the midcol halo rows conv2 reads but conv1 never writes ------------------
    zf_hi = head + P
    zb_lo = head + span_al - P
    zb_hi = min(rows_total, head + span_al + P * Wp + P)
    if zf_hi > 0:
        midcol_ref[0:zf_hi, :] = jnp.zeros((zf_hi, kcff), midcol_ref.dtype)
    if zb_hi > zb_lo:
        midcol_ref[zb_lo:zb_hi, :] = jnp.zeros((zb_hi - zb_lo, kcff), midcol_ref.dtype)

    # ---- conv1 (Cin -> Cff): K wide matmuls (depth K*Cin) per row tile, acc in vregs -------
    for r0 in range(head, head + span_al, row_tile):
        rows = min(row_tile, head + span_al - r0)
        acc = None
        for dh in range(K):
            base = r0 + (dh - P) * Wp                     # sublane-aligned (Wp % sub == 0)
            part = jnp.dot(xcol_ref[base:base + rows, :], w1_ref[dh],
                           preferred_element_type=jnp.float32)
            acc = part if acc is None else acc + part
        m = r0 - head
        # TODO(synk): if VALU becomes the binding slot, replace the full mask multiply with
        # narrow zeroing of just the 2P halo columns per image row.
        mid = gelu(acc + b1) * mask_ref[m:m + rows, :]
        mid = mid.astype(midcol_ref.dtype)
        # W-direction im2col of mid while storing: midcol[r, dw] = mid[r + dw - P]
        for dw in range(K):
            d = dw - P
            midcol_ref[r0 - d:r0 - d + rows, dw * cff:(dw + 1) * cff] = mid

    # ---- conv2 (Cff -> Cin): K wide matmuls (depth K*Cff) per row tile ----------------------
    for r0 in range(head, head + span_al, row_tile):
        rows = min(row_tile, head + span_al - r0)
        acc = None
        for dh in range(K):
            base = r0 + (dh - P) * Wp
            part = jnp.dot(midcol_ref[base:base + rows, :], w2_ref[dh],
                           preferred_element_type=jnp.float32)
            acc = part if acc is None else acc + part
        # Output halo rows (outside [head, head+span_al)) are intentionally never written;
        # the host strips them before any arithmetic.
        o_ref[r0:r0 + rows, :] = (acc + b2).astype(o_ref.dtype)


def inception_double_conv(x_nhwc, w1_hwio, b1, w2_hwio, b2, *, gelu,
                          compute_dtype=jnp.float32, batch_tile=1, row_tile=256,
                          vmem_limit_bytes=None):
    """Inception_Block_V1 -> GELU -> Inception_Block_V1 ('same' padding, stride 1)."""
    B, H, W, Cin = x_nhwc.shape
    K = w1_hwio.shape[0]
    Cff = w1_hwio.shape[3]
    P = (K - 1) // 2
    cdt = jnp.dtype(compute_dtype)
    sub = max(8, 32 // cdt.itemsize)                 # sublanes per vreg: 8 f32, 16 bf16

    # ---- sublane-aligned padded geometry -----------------------------------------------------
    Pl = _round_up(P, sub) if P > 0 else 0           # left W pad (>= P, multiple of sub)
    Wr = _round_up(W, sub)
    pr_req = (Wr - W) + P                            # keeps all shifted reads/stores in-bounds
    Pr = pr_req + ((-(W + Pl + pr_req)) % sub)       # right W pad; Wp multiple of sub
    Wp = W + Pl + Pr
    Hp = H + 2 * P
    img_r = Hp * Wp                                  # flat rows per image (multiple of sub)
    head = P * Wp + Pl                               # flat offset of interior (0,0)

    # batch tiling: keep >= 2 grid steps so both v7x TensorCores get work from the
    # "parallel" batch axis (irrelevant on single-TC v5e/v6e).
    bt = max(1, min(int(batch_tile), B if B < 2 else B // 2))
    Bp = _round_up(B, bt)
    block_rows = bt * img_r
    span = (bt - 1) * img_r + (H - 1) * Wp + W       # rows covering all interiors in a block
    span_al = _round_up(span, sub)
    assert head % sub == 0 and img_r % sub == 0 and Wp % sub == 0
    assert head + span_al + P * Wp + P <= block_rows  # every shifted read/store stays in block

    rt = min(span_al, _round_up(int(row_tile), sub))

    # ---- host-side layout prep: single pad + reshape (one HBM round trip) -------------------
    xf = jnp.pad(x_nhwc, ((0, Bp - B), (P, P), (Pl, Pr), (0, 0)))
    xf = xf.reshape(Bp * img_r, Cin).astype(cdt)

    # per-dh weights with the W taps folded into the contraction (dw-major, channel-minor)
    w1_dh = w1_hwio.reshape(K, K * Cin, Cff).astype(cdt)
    w2_dh = w2_hwio.reshape(K, K * Cff, Cin).astype(cdt)

    # interior mask over the per-step span: zeroes halo / alignment positions after GELU so
    # conv2's taps see exact zeros where 'same' padding requires them.
    r = np.arange(span_al) + head
    q = r % img_r
    row_i = q // Wp
    col_i = q % Wp
    interior = ((row_i >= P) & (row_i < P + H) & (col_i >= Pl) & (col_i < Pl + W))
    mask = jnp.asarray(interior.astype(np.float32).reshape(span_al, 1))

    if vmem_limit_bytes is None:
        vmem_limit_bytes = _default_vmem_limit_bytes()

    kernel = functools.partial(_inception_conv_kernel, K=K, P=P, Wp=Wp, head=head,
                               span_al=span_al, row_tile=rt, gelu=gelu)

    out_flat = pl.pallas_call(
        kernel,
        out_shape=jax.ShapeDtypeStruct((Bp * img_r, Cin), cdt),
        grid=(Bp // bt,),
        in_specs=[
            pl.BlockSpec((block_rows, Cin), lambda b: (b, 0)),
            # constant-index weight blocks: fetched once across the grid.
            # TODO(synk): at production d_ff (~2048) add pipeline_mode=pl.Buffered(1) on the
            # two weight blocks plus an "arbitrary" Cff-tiling grid axis so the weight slab
            # fits v7x's 64 MiB VMEM.
            pl.BlockSpec((K, K * Cin, Cff), lambda b: (0, 0, 0)),
            pl.BlockSpec((1, Cff), lambda b: (0, 0)),
            pl.BlockSpec((K, K * Cff, Cin), lambda b: (0, 0, 0)),
            pl.BlockSpec((1, Cin), lambda b: (0, 0)),
            pl.BlockSpec((span_al, 1), lambda b: (0, 0)),
        ],
        out_specs=pl.BlockSpec((block_rows, Cin), lambda b: (b, 0)),
        scratch_shapes=[pltpu.VMEM((block_rows, K * Cin), cdt),
                        pltpu.VMEM((block_rows, K * Cff), cdt)],
        compiler_params=pltpu.CompilerParams(
            dimension_semantics=("parallel",),       # batch blocks independent (2 TCs on v7x)
            vmem_limit_bytes=int(vmem_limit_bytes)),
    )(xf, w1_dh, b1, w2_dh, b2, mask)

    # un-pad: strip alignment / halo rows (plain XLA slicing; unwritten rows never read).
    # TODO(synk): if d_model stays << 128 in production, evaluate a lane-dense output layout
    # (folding consecutive flat rows into lanes) to densify the writeback further.
    out = out_flat.reshape(Bp, Hp, Wp, Cin)[:B, P:P + H, Pl:Pl + W, :]
    return out.astype(jnp.float32)


# ----------------------------------------------------------------------------- glue (plain JAX)
def fft_for_period(x, k):
    # TODO(synk): no Pallas FFT primitive -- rfft/top-k done in plain JAX; top-k indices are
    # pulled to host (mirrors torch's .cpu().numpy()), which forces a host sync and makes the
    # per-period shapes static (recompiles per distinct period set).
    xf = jnp.fft.rfft(x, axis=1)
    amp = jnp.abs(xf)                                   # (B, F, N)
    freq = amp.mean(axis=0).mean(axis=-1).at[0].set(0.0)
    _, top_idx = lax.top_k(freq, k)
    top_idx = np.asarray(jax.device_get(top_idx))
    # guard the degenerate case where bin 0 is still selected (torch would divide by zero)
    safe_idx = np.maximum(top_idx, 1)
    period = (x.shape[1] // safe_idx).astype(np.int64)
    period_weight = amp.mean(axis=-1)[:, top_idx]       # (B, k)
    return period, period_weight


def times_block_forward(x, params, *, seq_len, pred_len, top_k, gelu,
                        compute_dtype=jnp.float32, batch_tile=1):
    B, T, N = x.shape
    total = seq_len + pred_len
    period_list, period_weight = fft_for_period(x, top_k)
    w1, b1, w2, b2 = params["w1"], params["b1"], params["w2"], params["b2"]

    res = []
    for i in range(top_k):
        period = int(period_list[i])
        if total % period != 0:
            length = ((total // period) + 1) * period
            out = jnp.concatenate(
                [x, jnp.zeros((B, length - total, N), x.dtype)], axis=1)
        else:
            length = total
            out = x
        out = out.reshape(B, length // period, period, N)   # NHWC, channels on TPU lanes
        out = inception_double_conv(out, w1, b1, w2, b2, gelu=gelu,
                                    compute_dtype=compute_dtype, batch_tile=batch_tile)
        res.append(out.reshape(B, length, N)[:, :total, :])

    res = jnp.stack(res, axis=-1)                           # (B, T, N, k)
    w = jax.nn.softmax(period_weight, axis=1)               # (B, k)
    # TODO(synk): aggregation kept in plain JAX (einsum) per perf review -- the VPU work is
    # tiny and a per-batch Pallas launch costs more than it saves.
    return jnp.einsum('btnk,bk->btn', res, w) + x


def make_effective_inception_params(key, cin, cout, num_kernels):
    """Inception_Block_V1 params: num_kernels Conv2d's (ks=1,3,...,2nk-1, 'same' pad), averaged.
    Folded exactly into one HWIO kernel of size Kmax (centered zero-padding of smaller kernels)."""
    K = 2 * num_kernels - 1
    w_sum = jnp.zeros((K, K, cin, cout), jnp.float32)
    b_sum = jnp.zeros((cout,), jnp.float32)
    keys = jax.random.split(key, 2 * num_kernels)
    for i in range(num_kernels):
        ks = 2 * i + 1
        w_oihw = 0.1 * jax.random.normal(keys[2 * i], (cout, cin, ks, ks), jnp.float32)
        b = 0.05 * jax.random.normal(keys[2 * i + 1], (cout,), jnp.float32)
        w_hwio = jnp.transpose(w_oihw, (2, 3, 1, 0))
        q = (K - ks) // 2
        w_sum = w_sum + jnp.pad(w_hwio, ((q, q), (q, q), (0, 0), (0, 0)))
        b_sum = b_sum + b
    return w_sum / num_kernels, (b_sum / num_kernels).reshape(1, cout)


def _reference_forward(x, params, *, seq_len, pred_len, top_k, use_erf):
    """Pure-JAX reference (XLA conv) with the same GELU flavor as the kernel."""
    B, T, N = x.shape
    total = seq_len + pred_len
    period_list, period_weight = fft_for_period(x, top_k)
    w1, b1, w2, b2 = params["w1"], params["b1"], params["w2"], params["b2"]
    dn = ("NHWC", "HWIO", "NHWC")
    res = []
    for i in range(top_k):
        period = int(period_list[i])
        length = total if total % period == 0 else ((total // period) + 1) * period
        out = x if length == total else jnp.concatenate(
            [x, jnp.zeros((B, length - total, N), x.dtype)], axis=1)
        out = out.reshape(B, length // period, period, N)
        y = lax.conv_general_dilated(out, w1, (1, 1), "SAME", dimension_numbers=dn) + b1[0]
        y = jax.nn.gelu(y, approximate=not use_erf)
        y = lax.conv_general_dilated(y, w2, (1, 1), "SAME", dimension_numbers=dn) + b2[0]
        res.append(y.reshape(B, length, N)[:, :total, :])
    res = jnp.stack(res, axis=-1)
    w = jax.nn.softmax(period_weight, axis=1)[:, None, None, :]
    return jnp.sum(res * w, axis=-1) + x


# ----------------------------------------------------------------------------- main
if __name__ == "__main__":
    seq_len, pred_len = 12, 4
    top_k = 2
    d_model, d_ff, num_kernels = 16, 32, 2
    B = 2
    T = seq_len + pred_len

    key = jax.random.PRNGKey(0)
    kx, k1, k2 = jax.random.split(key, 3)
    x = jax.random.normal(kx, (B, T, d_model), jnp.float32)
    w1, b1 = make_effective_inception_params(k1, d_model, d_ff, num_kernels)
    w2, b2 = make_effective_inception_params(k2, d_ff, d_model, num_kernels)
    params = {"w1": w1, "b1": b1, "w2": w2, "b2": b2}

    use_erf = _erf_lowers_in_pallas()
    gelu = _make_gelu(use_erf)

    # f32 path: one batch element per grid step -> grid=(2,), even and >= 2 ("parallel" axis)
    out = times_block_forward(x, params, seq_len=seq_len, pred_len=pred_len, top_k=top_k,
                              gelu=gelu, compute_dtype=jnp.float32, batch_tile=1)
    out = jax.block_until_ready(out)
    assert out.shape == (B, T, d_model) and out.dtype == jnp.float32

    # validate against a pure-JAX (XLA conv) reference using the matching GELU flavor
    ref = _reference_forward(x, params, seq_len=seq_len, pred_len=pred_len, top_k=top_k,
                             use_erf=use_erf)
    np.testing.assert_allclose(np.asarray(out), np.asarray(ref), rtol=2e-3, atol=2e-3)

    # bf16 weights/activations/output (production setting: full-rate MXU, half the VMEM/HBM
    # traffic).  batch_tile=2 is requested but clamped so the grid keeps >= 2 steps (v7x TCs).
    out_bf16 = times_block_forward(x, params, seq_len=seq_len, pred_len=pred_len, top_k=top_k,
                                   gelu=gelu, compute_dtype=jnp.bfloat16, batch_tile=2)
    out_bf16 = jax.block_until_ready(out_bf16)
    np.testing.assert_allclose(np.asarray(out_bf16), np.asarray(out), rtol=7.5e-2, atol=7.5e-2)

    print("KERNEL_OK")
</pallas_src>

<mosaic_0001>
module attributes {stable_mosaic.version = 11 : i64} {
  func.func @_inception_conv_kernel(%arg0: i32, %arg1: memref<240x16xf32, #tpu.memory_space<vmem>>, %arg2: memref<3x48x32xf32, #tpu.memory_space<vmem>>, %arg3: memref<1x32xf32, #tpu.memory_space<vmem>>, %arg4: memref<3x96x16xf32, #tpu.memory_space<vmem>>, %arg5: memref<1x16xf32, #tpu.memory_space<vmem>>, %arg6: memref<176x1xf32, #tpu.memory_space<vmem>>, %arg7: memref<240x16xf32, #tpu.memory_space<vmem>>, %arg8: memref<240x48xf32, #tpu.memory_space<vmem>>, %arg9: memref<240x96xf32, #tpu.memory_space<vmem>>) attributes {dimension_semantics = [#tpu.dimension_semantics<parallel>], iteration_bounds = array<i64: 2>, scalar_prefetch = 0 : i64, scratch_operands = 2 : i64, tpu.core_type = #tpu.core_type<tc>, window_params = [{transform_indices = @transform_0, window_bounds = array<i64: 240, 16>}, {pipeline_mode = #tpu.pipeline_mode<synchronous>, transform_indices = @transform_1, window_bounds = array<i64: 3, 48, 32>}, {pipeline_mode = #tpu.pipeline_mode<synchronous>, transform_indices = @transform_2, window_bounds = array<i64: 1, 32>}, {pipeline_mode = #tpu.pipeline_mode<synchronous>, transform_indices = @transform_3, window_bounds = array<i64: 3, 96, 16>}, {pipeline_mode = #tpu.pipeline_mode<synchronous>, transform_indices = @transform_4, window_bounds = array<i64: 1, 16>}, {pipeline_mode = #tpu.pipeline_mode<synchronous>, transform_indices = @transform_5, window_bounds = array<i64: 176, 1>}, {transform_indices = @transform_6, window_bounds = array<i64: 240, 16>}]} {
    %c0 = arith.constant 0 : index
    %c0_0 = arith.constant 0 : index
    %0 = vector.load %arg3[%c0, %c0_0] : memref<1x32xf32, #tpu.memory_space<vmem>>, vector<1x32xf32>
    %c0_1 = arith.constant 0 : index
    %c0_2 = arith.constant 0 : index
    %1 = vector.load %arg5[%c0_1, %c0_2] : memref<1x16xf32, #tpu.memory_space<vmem>>, vector<1x16xf32>
    %c0_3 = arith.constant 0 : index
    %c0_4 = arith.constant 0 : index
    %2 = vector.load %arg1[%c0_3, %c0_4] : memref<240x16xf32, #tpu.memory_space<vmem>>, vector<239x16xf32>
    %c1 = arith.constant 1 : index
    %c0_5 = arith.constant 0 : index
    %3 = vector.load %arg8[%c1, %c0_5] : memref<240x48xf32, #tpu.memory_space<vmem>>, vector<239x16xf32>
    tpu.vector_store %arg8[%c1, %c0_5], %2 {strides = array<i32>} : memref<240x48xf32, #tpu.memory_space<vmem>>, vector<239x16xf32>,
    %c0_6 = arith.constant 0 : index
    %c0_7 = arith.constant 0 : index
    %4 = vector.load %arg1[%c0_6, %c0_7] : memref<240x16xf32, #tpu.memory_space<vmem>>, vector<240x16xf32>
    %c0_8 = arith.constant 0 : index
    %c16 = arith.constant 16 : index
    %5 = vector.load %arg8[%c0_8, %c16] : memref<240x48xf32, #tpu.memory_space<vmem>>, vector<240x16xf32>
    tpu.vector_store %arg8[%c0_8, %c16], %4 {strides = array<i32>} : memref<240x48xf32, #tpu.memory_space<vmem>>, vector<240x16xf32>,
    %c1_9 = arith.constant 1 : index
    %c0_10 = arith.constant 0 : index
    %6 = vector.load %arg1[%c1_9, %c0_10] : memref<240x16xf32, #tpu.memory_space<vmem>>, vector<239x16xf32>
    %c0_11 = arith.constant 0 : index
    %c32 = arith.constant 32 : index
    %7 = vector.load %arg8[%c0_11, %c32] : memref<240x48xf32, #tpu.memory_space<vmem>>, vector<239x16xf32>
    tpu.vector_store %arg8[%c0_11, %c32], %6 {strides = array<i32>} : memref<240x48xf32, #tpu.memory_space<vmem>>, vector<239x16xf32>,
    %cst = arith.constant 0.000000e+00 : f32
    %8 = vector.broadcast %cst : f32 to vector<33x96xf32>
    %c0_12 = arith.constant 0 : index
    %c0_13 = arith.constant 0 : index
    %9 = vector.load %arg9[%c0_12, %c0_13] : memref<240x96xf32, #tpu.memory_space<vmem>>, vector<33x96xf32>
    tpu.vector_store %arg9[%c0_12, %c0_13], %8 {strides = array<i32>} : memref<240x96xf32, #tpu.memory_space<vmem>>, vector<33x96xf32>,
    %cst_14 = arith.constant 0.000000e+00 : f32
    %10 = vector.broadcast %cst_14 : f32 to vector<26x96xf32>
    %c207 = arith.constant 207 : index
    %c0_15 = arith.constant 0 : index
    %11 = vector.load %arg9[%c207, %c0_15] : memref<240x96xf32, #tpu.memory_space<vmem>>, vector<26x96xf32>
    tpu.vector_store %arg9[%c207, %c0_15], %10 {strides = array<i32>} : memref<240x96xf32, #tpu.memory_space<vmem>>, vector<26x96xf32>,
    %c8 = arith.constant 8 : index
    %c0_16 = arith.constant 0 : index
    %12 = vector.load %arg8[%c8, %c0_16] : memref<240x48xf32, #tpu.memory_space<vmem>>, vector<176x48xf32>
    %c0_17 = arith.constant 0 : index
    %c0_18 = arith.constant 0 : index
    %c0_19 = arith.constant 0 : index
    %13 = vector.load %arg2[%c0_17, %c0_18, %c0_19] : memref<3x48x32xf32, #tpu.memory_space<vmem>>, vector<1x48x32xf32>
    %14 = vector.shape_cast %13 : vector<1x48x32xf32> to vector<48x32xf32>
    %cst_20 = arith.constant dense<0.000000e+00> : vector<176x32xf32>
    %15 = tpu.matmul %12, %14, %cst_20 {dimension_numbers = #tpu.dot_dimension_numbers<[1], [0], [0], [1], [0, 0, 1, 1], [], []>} : vector<176x48xf32>, vector<48x32xf32>, vector<176x32xf32> -> vector<176x32xf32>
    %c32_21 = arith.constant 32 : index
    %c0_22 = arith.constant 0 : index
    %16 = vector.load %arg8[%c32_21, %c0_22] : memref<240x48xf32, #tpu.memory_space<vmem>>, vector<176x48xf32>
    %c1_23 = arith.constant 1 : index
    %c0_24 = arith.constant 0 : index
    %c0_25 = arith.constant 0 : index
    %17 = vector.load %arg2[%c1_23, %c0_24, %c0_25] : memref<3x48x32xf32, #tpu.memory_space<vmem>>, vector<1x48x32xf32>
    %18 = vector.shape_cast %17 : vector<1x48x32xf32> to vector<48x32xf32>
    %cst_26 = arith.constant dense<0.000000e+00> : vector<176x32xf32>
    %19 = tpu.matmul %16, %18, %cst_26 {dimension_numbers = #tpu.dot_dimension_numbers<[1], [0], [0], [1], [0, 0, 1, 1], [], []>} : vector<176x48xf32>, vector<48x32xf32>, vector<176x32xf32> -> vector<176x32xf32>
    %20 = arith.addf %15, %19 : vector<176x32xf32>
    %c56 = arith.constant 56 : index
    %c0_27 = arith.constant 0 : index
    %21 = vector.load %arg8[%c56, %c0_27] : memref<240x48xf32, #tpu.memory_space<vmem>>, vector<176x48xf32>
    %c2 = arith.constant 2 : index
    %c0_28 = arith.constant 0 : index
    %c0_29 = arith.constant 0 : index
    %22 = vector.load %arg2[%c2, %c0_28, %c0_29] : memref<3x48x32xf32, #tpu.memory_space<vmem>>, vector<1x48x32xf32>
    %23 = vector.shape_cast %22 : vector<1x48x32xf32> to vector<48x32xf32>
    %cst_30 = arith.constant dense<0.000000e+00> : vector<176x32xf32>
    %24 = tpu.matmul %21, %23, %cst_30 {dimension_numbers = #tpu.dot_dimension_numbers<[1], [0], [0], [1], [0, 0, 1, 1], [], []>} : vector<176x48xf32>, vector<48x32xf32>, vector<176x32xf32> -> vector<176x32xf32>
    %25 = arith.addf %20, %24 : vector<176x32xf32>
    %26 = vector.broadcast %0 : vector<1x32xf32> to vector<176x32xf32>
    %27 = arith.addf %25, %26 : vector<176x32xf32>
    %cst_31 = arith.constant 5.000000e-01 : f32
    %28 = vector.broadcast %cst_31 : f32 to vector<176x32xf32>
    %29 = arith.mulf %28, %27 : vector<176x32xf32>
    %cst_32 = arith.constant 4.471500e-02 : f32
    %30 = vector.broadcast %cst_32 : f32 to vector<176x32xf32>
    %31 = arith.mulf %30, %27 : vector<176x32xf32>
    %32 = arith.mulf %31, %27 : vector<176x32xf32>
    %33 = arith.mulf %32, %27 : vector<176x32xf32>
    %34 = arith.addf %27, %33 : vector<176x32xf32>
    %cst_33 = arith.constant 0.797884583 : f32
    %35 = vector.broadcast %cst_33 : f32 to vector<176x32xf32>
    %36 = arith.mulf %35, %34 : vector<176x32xf32>
    %37 = math.tanh %36 : vector<176x32xf32>
    %cst_34 = arith.constant 1.000000e+00 : f32
    %38 = vector.broadcast %cst_34 : f32 to vector<176x32xf32>
    %39 = arith.addf %38, %37 : vector<176x32xf32>
    %40 = arith.mulf %29, %39 : vector<176x32xf32>
    %c0_35 = arith.constant 0 : index
    %c0_36 = arith.constant 0 : index
    %41 = vector.load %arg6[%c0_35, %c0_36] : memref<176x1xf32, #tpu.memory_space<vmem>>, vector<176x1xf32>
    %42 = vector.broadcast %41 : vector<176x1xf32> to vector<176x32xf32>
    %43 = arith.mulf %40, %42 : vector<176x32xf32>
    %c33 = arith.constant 33 : index
    %c0_37 = arith.constant 0 : index
    %44 = vector.load %arg9[%c33, %c0_37] : memref<240x96xf32, #tpu.memory_space<vmem>>, vector<176x32xf32>
    tpu.vector_store %arg9[%c33, %c0_37], %43 {strides = array<i32>} : memref<240x96xf32, #tpu.memory_space<vmem>>, vector<176x32xf32>,
    %c32_38 = arith.constant 32 : index
    %c32_39 = arith.constant 32 : index
    %45 = vector.load %arg9[%c32_38, %c32_39] : memref<240x96xf32, #tpu.memory_space<vmem>>, vector<176x32xf32>
    tpu.vector_store %arg9[%c32_38, %c32_39], %43 {strides = array<i32>} : memref<240x96xf32, #tpu.memory_space<vmem>>, vector<176x32xf32>,
    %c31 = arith.constant 31 : index
    %c64 = arith.constant 64 : index
    %46 = vector.load %arg9[%c31, %c64] : memref<240x96xf32, #tpu.memory_space<vmem>>, vector<176x32xf32>
    tpu.vector_store %arg9[%c31, %c64], %43 {strides = array<i32>} : memref<240x96xf32, #tpu.memory_space<vmem>>, vector<176x32xf32>,
    %c8_40 = arith.constant 8 : index
    %c0_41 = arith.constant 0 : index
    %47 = vector.load %arg9[%c8_40, %c0_41] : memref<240x96xf32, #tpu.memory_space<vmem>>, vector<176x96xf32>
    %c0_42 = arith.constant 0 : index
    %c0_43 = arith.constant 0 : index
    %c0_44 = arith.constant 0 : index
    %48 = vector.load %arg4[%c0_42, %c0_43, %c0_44] : memref<3x96x16xf32, #tpu.memory_space<vmem>>, vector<1x96x16xf32>
    %49 = vector.shape_cast %48 : vector<1x96x16xf32> to vector<96x16xf32>
    %cst_45 = arith.constant dense<0.000000e+00> : vector<176x16xf32>
    %50 = tpu.matmul %47, %49, %cst_45 {dimension_numbers = #tpu.dot_dimension_numbers<[1], [0], [0], [1], [0, 0, 1, 1], [], []>} : vector<176x96xf32>, vector<96x16xf32>, vector<176x16xf32> -> vector<176x16xf32>
    %c32_46 = arith.constant 32 : index
    %c0_47 = arith.constant 0 : index
    %51 = vector.load %arg9[%c32_46, %c0_47] : memref<240x96xf32, #tpu.memory_space<vmem>>, vector<176x96xf32>
    %c1_48 = arith.constant 1 : index
    %c0_49 = arith.constant 0 : index
    %c0_50 = arith.constant 0 : index
    %52 = vector.load %arg4[%c1_48, %c0_49, %c0_50] : memref<3x96x16xf32, #tpu.memory_space<vmem>>, vector<1x96x16xf32>
    %53 = vector.shape_cast %52 : vector<1x96x16xf32> to vector<96x16xf32>
    %cst_51 = arith.constant dense<0.000000e+00> : vector<176x16xf32>
    %54 = tpu.matmul %51, %53, %cst_51 {dimension_numbers = #tpu.dot_dimension_numbers<[1], [0], [0], [1], [0, 0, 1, 1], [], []>} : vector<176x96xf32>, vector<96x16xf32>, vector<176x16xf32> -> vector<176x16xf32>
    %55 = arith.addf %50, %54 : vector<176x16xf32>
    %c56_52 = arith.constant 56 : index
    %c0_53 = arith.constant 0 : index
    %56 = vector.load %arg9[%c56_52, %c0_53] : memref<240x96xf32, #tpu.memory_space<vmem>>, vector<176x96xf32>
    %c2_54 = arith.constant 2 : index
    %c0_55 = arith.constant 0 : index
    %c0_56 = arith.constant 0 : index
    %57 = vector.load %arg4[%c2_54, %c0_55, %c0_56] : memref<3x96x16xf32, #tpu.memory_space<vmem>>, vector<1x96x16xf32>
    %58 = vector.shape_cast %57 : vector<1x96x16xf32> to vector<96x16xf32>
    %cst_57 = arith.constant dense<0.000000e+00> : vector<176x16xf32>
    %59 = tpu.matmul %56, %58, %cst_57 {dimension_numbers = #tpu.dot_dimension_numbers<[1], [0], [0], [1], [0, 0, 1, 1], [], []>} : vector<176x96xf32>, vector<96x16xf32>, vector<176x16xf32> -> vector<176x16xf32>
    %60 = arith.addf %55, %59 : vector<176x16xf32>
    %61 = vector.broadcast %1 : vector<1x16xf32> to vector<176x16xf32>
    %62 = arith.addf %60, %61 : vector<176x16xf32>
    %c32_58 = arith.constant 32 : index
    %c0_59 = arith.constant 0 : index
    %63 = vector.load %arg7[%c32_58, %c0_59] : memref<240x16xf32, #tpu.memory_space<vmem>>, vector<176x16xf32>
    tpu.vector_store %arg7[%c32_58, %c0_59], %62 {strides = array<i32>} : memref<240x16xf32, #tpu.memory_space<vmem>>, vector<176x16xf32>,
    return
  }
  func.func @transform_0(%arg0: i32) -> (i32, i32) {
    %c0_i32 = arith.constant 0 : i32
    %c0_i32_0 = arith.constant 0 : i32
    return %arg0, %c0_i32 : i32, i32
  }
  func.func @transform_1(%arg0: i32) -> (i32, i32, i32) {
    %c0_i32 = arith.constant 0 : i32
    %c0_i32_0 = arith.constant 0 : i32
    %c0_i32_1 = arith.constant 0 : i32
    %c0_i32_2 = arith.constant 0 : i32
    return %c0_i32, %c0_i32_0, %c0_i32_1 : i32, i32, i32
  }
  func.func @transform_2(%arg0: i32) -> (i32, i32) {
    %c0_i32 = arith.constant 0 : i32
    %c0_i32_0 = arith.constant 0 : i32
    %c0_i32_1 = arith.constant 0 : i32
    return %c0_i32, %c0_i32_0 : i32, i32
  }
  func.func @transform_3(%arg0: i32) -> (i32, i32, i32) {
    %c0_i32 = arith.constant 0 : i32
    %c0_i32_0 = arith.constant 0 : i32
    %c0_i32_1 = arith.constant 0 : i32
    %c0_i32_2 = arith.constant 0 : i32
    return %c0_i32, %c0_i32_0, %c0_i32_1 : i32, i32, i32
  }
  func.func @transform_4(%arg0: i32) -> (i32, i32) {
    %c0_i32 = arith.constant 0 : i32
    %c0_i32_0 = arith.constant 0 : i32
    %c0_i32_1 = arith.constant 0 : i32
    return %c0_i32, %c0_i32_0 : i32, i32
  }
  func.func @transform_5(%arg0: i32) -> (i32, i32) {
    %c0_i32 = arith.constant 0 : i32
    %c0_i32_0 = arith.constant 0 : i32
    %c0_i32_1 = arith.constant 0 : i32
    return %c0_i32, %c0_i32_0 : i32, i32
  }
  func.func @transform_6(%arg0: i32) -> (i32, i32) {
    %c0_i32 = arith.constant 0 : i32
    %c0_i32_0 = arith.constant 0 : i32
    return %arg0, %c0_i32 : i32, i32
  }
}

</mosaic_0001>

<bundles_post_ra>
// kernel: tpu_custom_call.1
= control target key start
LH: loop header
LB: loop body
LE: loop exit
PB: predicated region body
PF: predicated region fallthrough
CT: control target
= control target key end

     0   :  { %s2686_s21 = smov 0   ;;  %s3709_s0 = inlined_call_operand.vmem [shape: f32[480,16], index: 0, kind: input, shape index: {}]   ;;  %s3710_s1 = inlined_call_operand.vmem [shape: f32[3,48,32], index: 1, kind: input, shape index: {}]   ;;  %s3711_s2 = inlined_call_operand.vmem [shape: f32[1,32], index: 2, kind: input, shape index: {}]   ;;  %s3712_s3 = inlined_call_operand.vmem [shape: f32[3,96,16], index: 3, kind: input, shape index: {}]   ;;  %s3713_s4 = inlined_call_operand.vmem [shape: f32[1,16], index: 4, kind: input, shape index: {}]   ;;  %s3714_s5 = inlined_call_operand.vmem [shape: f32[176,1], index: 5, kind: input, shape index: {}]   ;;  %s3715_s6 = inlined_call_operand.vmem [shape: f32[480,16], index: 6, kind: output, shape index: {}]  }
   0x1 LB: > { %s2374_s22 = sadd.s32 4294967295, %s2644_s21   ;;  %p2378_p0 = scmp.ge.s32.totalorder %s2644_s21, 1  ;;  %s2644_s21 = sphi %s2686_s21, %s16_s21  }
   0x2   : > { %p213_p1 = scmp.lt.s32.totalorder %s2644_s21, 3 }
   0x4   : > { %p214_p2 = pnand %p2378_p0, %p213_p1 }
   0x5   : > { %s243_s23 = smul.u32 (!%p214_p2), 30, %s2374_s22  ;;  %s2646_s28 = smov (!%p214_p2), 16  }
   0x6   : > { %217 = sbr.rel (%p214_p2) target bundleno = 888 (0x378), region = 44  ;;  %s2647_s29 = smov (!%p214_p2), 32  }
   0x7   : > { %p244_p3 = scmp.lt.s32.totalorder (!%p214_p2), %s243_s23, 59  ;;  %s2649_s10 = smov (!%p214_p2), 64  }
   0xb   : > { %s3717_s23 = smov (!%p244_p3, %s243_s23), 59  ;;  %vm287_vm0 = vcmask 130048   ;;  %v2386_v34 = vld [vmem:[%s3710_s1 + $0x58] sm:$0xff]  ;;  %v2385_v38 = vld [vmem:[%s3710_s1 + $0x50] sm:$0xff]  ;;  %v2384_v39 = vld [vmem:[%s3710_s1 + $0x48] sm:$0xff]  ;;  %vm469_vm1 = vcmask 261248  }
   0xc   : > { %s2379_s24 = sshll.u32 %s3717_s23, 3  ;;  %2551 = vmatpush.msra.mxu2 %v2386_v34  ;;  %809 = vmatpush.msra.mxu0 %v2386_v34  ;;  %v2383_v40 = vld [vmem:[%s3710_s1 + $0x40] sm:$0xff]  ;;  %v2382_v44 = vld [vmem:[%s3710_s1 + $0x38] sm:$0xff]  ;;  %v2381_v46 = vld [vmem:[%s3710_s1 + $0x30] sm:$0xff]  ;;  %vm650_vm2 = vcmask 392448   ;;  %vm732_vm3 = vcmask 392192  }
   0xd   : > { %s2702_s27 = scalar_lea.vmem %s3709_s0, %s2379_s24  ;;  %v2436_v47 = vld [vmem:[%s3710_s1 + $0x88] sm:$0xff]  ;;  %v2435_v55 = vld [vmem:[%s3710_s1 + $0x80] sm:$0xff]  ;;  %vm1551_vm4 = vcmask 261120   ;;  %vm682_vm5 = vcmask 785408   ;;  %vm687_vm6 = vcmask 778240   ;;  %vm1662_vm7 = vcmask 523520   ;;  %s3596_s9 = scalar_lea.vmem %s3715_s6, %s2379_s24 }
   0xe   : > { %v2705_v0 = vld [vmem:[%s2702_s27 + $0x88] sm:$0xff]  ;;  %v2708_v1 = vld [vmem:[%s2702_s27 + $0x80] sm:$0xff]  ;;  %v2715_v2 = vld [vmem:[%s2702_s27 + $0x90] sm:$0xff]  ;;  %2552 = vmatpush.msra.mxu2 %v2385_v38  ;;  %810 = vmatpush.msra.mxu0 %v2385_v38  ;;  %vm1751_vm8 = vcmask 785920   ;;  %vm692_vm9 = vcmask 779264  }
   0xf   : > { %413 = vrot.lane.b32.xlu1 %v2705_v0, %s2646_s28  ;;  %411 = vrot.lane.b32.xlu0 %v2708_v1, %s2646_s28  ;;  %v517_v3 = vld [vmem:[%s2702_s27 + $0x89] sm:$0xff]  ;;  %v516_v4 = vld [vmem:[%s2702_s27 + $0x81] sm:$0xff]  ;;  %304 = vst.msk [vmem:[#allocation2 + $0x81] sm:$0xff] %vm287_vm0, %v2708_v1 }
  0x10   : > { %415 = vrot.lane.b32.xlu2 %v2715_v2, %s2646_s28  ;;  %v518_v5 = vld [vmem:[%s2702_s27 + $0x91] sm:$0xff]  ;;  %v519_v6 = vld [vmem:[%s2702_s27 + $0x99] sm:$0xff]  ;;  %v340_v9 = vld [vmem:[%s2702_s27 + $0xa8] sm:$0xff]  ;;  %305 = vst.msk [vmem:[#allocation2 + $0x89] sm:$0xff] %vm287_vm0, %v2705_v0  ;;  %2553 = vmatpush.msra.mxu2 %v2384_v39 }
  0x11   : > { %v2727_v7 = vld [vmem:[%s2702_s27 + $0x98] sm:$0xff]  ;;  %v339_v8 = vld [vmem:[%s2702_s27 + $0xa0] sm:$0xff]  ;;  %v521_v11 = vld [vmem:[%s2702_s27 + $0xa9] sm:$0xff]  ;;  %306 = vst.msk [vmem:[#allocation2 + $0x91] sm:$0xff] %vm287_vm0, %v2715_v2  ;;  %811 = vmatpush.msra.mxu0 %v2384_v39 }
  0x12   : > { %v520_v10 = vld [vmem:[%s2702_s27 + $0xa1] sm:$0xff]  ;;  %v522_v12 = vld [vmem:[%s2702_s27 + $0xb1] sm:$0xff]  ;;  %v523_v16 = vld [vmem:[%s2702_s27 + $0xb9] sm:$0xff]  ;;  %307 = vst.msk [vmem:[#allocation2 + $0x99] sm:$0xff] %vm287_vm0, %v2727_v7  ;;  %2554 = vmatpush.msra.mxu2 %v2383_v40 }
  0x13   : > { %v341_v13 = vld [vmem:[%s2702_s27 + $0xb0] sm:$0xff]  ;;  %v342_v14 = vld [vmem:[%s2702_s27 + $0xb8] sm:$0xff]  ;;  %v343_v15 = vld [vmem:[%s2702_s27 + $0xc0] sm:$0xff]  ;;  %308 = vst.msk [vmem:[#allocation2 + $0xa1] sm:$0xff] %vm287_vm0, %v339_v8  ;;  %812 = vmatpush.msra.mxu0 %v2383_v40 }
  0x14   : > { %v524_v17 = vld [vmem:[%s2702_s27 + $0xc1] sm:$0xff]  ;;  %v525_v18 = vld [vmem:[%s2702_s27 + $0xc9] sm:$0xff]  ;;  %v326_v20 = vld [vmem:[%s2702_s27 + $0x38] sm:$0xff]  ;;  %309 = vst.msk [vmem:[#allocation2 + $0xa9] sm:$0xff] %vm287_vm0, %v340_v9  ;;  %2555 = vmatpush.msra.mxu2 %v2382_v44 }
  0x15   : > { %v344_v19 = vld [vmem:[%s2702_s27 + $0xc8] sm:$0xff]  ;;  %v507_v21 = vld [vmem:[%s2702_s27 + $0x39] sm:$0xff]  ;;  %v321_v28 = vld [vmem:[%s2702_s27 + $0x10] sm:$0xff]  ;;  %310 = vst.msk [vmem:[#allocation2 + $0xb1] sm:$0xff] %vm287_vm0, %v341_v13  ;;  %813 = vmatpush.msra.mxu0 %v2382_v44 }
  0x16   : > { %v320_v22 = vld [vmem:[%s2702_s27 + $0x8] sm:$0xff]  ;;  %v2763_v23 = vld [vmem:[%s2702_s27 + $0x20] sm:$0xff]  ;;  %v502_v30 = vld [vmem:[%s2702_s27 + $0x11] sm:$0xff]  ;;  %311 = vst.msk [vmem:[#allocation2 + $0xb9] sm:$0xff] %vm287_vm0, %v342_v14  ;;  %2556 = vmatpush.msra.mxu2 %v2381_v46 }
  0x17   : > { %594 = vrot.lane.b32.xlu1 %v517_v3, %s2647_s29  ;;  %592 = vrot.lane.b32.xlu0 %v516_v4, %s2647_s29  ;;  %v501_v24 = vld [vmem:[%s2702_s27 + $0x9] sm:$0xff]  ;;  %v504_v25 = vld [vmem:[%s2702_s27 + $0x21] sm:$0xff]  ;;  %312 = vst.msk [vmem:[#allocation2 + $0xc1] sm:$0xff] %vm287_vm0, %v343_v15 }
  0x18   : > { %596 = vrot.lane.b32.xlu2 %v518_v5, %s2647_s29  ;;  %v327_v26 = vld [vmem:[%s2702_s27 + $0x40] sm:$0xff]  ;;  %v324_v29 = vld [vmem:[%s2702_s27 + $0x28] sm:$0xff]  ;;  %v2787_v33 = vld [vmem:[%s2702_s27 + $0x78] sm:$0xff]  ;;  %313 = vst.msk [vmem:[#allocation2 + $0xc9] sm:$0xff] %vm287_vm0, %v344_v19  ;;  %814 = vmatpush.msra.mxu0 %v2381_v46 }
  0x19   : > { %v508_v27 = vld [vmem:[%s2702_s27 + $0x41] sm:$0xff]  ;;  %v505_v31 = vld [vmem:[%s2702_s27 + $0x29] sm:$0xff]  ;;  %303 = vst.msk [vmem:[#allocation2 + $0x79] sm:$0xff] %vm287_vm0, %v2787_v33  ;;  %v322_v36 = vld [vmem:[%s2702_s27 + $0x18] sm:$0xff]  ;;  %1079 = vmatpush.msrb.mxu2 %v2436_v47 }
  0x1a   : > { %v328_v32 = vld [vmem:[%s2702_s27 + $0x48] sm:$0xff]  ;;  %v325_v37 = vld [vmem:[%s2702_s27 + $0x30] sm:$0xff]  ;;  %v503_v41 = vld [vmem:[%s2702_s27 + $0x19] sm:$0xff]  ;;  %295 = vst.msk [vmem:[#allocation2 + $0x39] sm:$0xff] %vm287_vm0, %v326_v20 }
  0x1b   : > { %v509_v35 = vld [vmem:[%s2702_s27 + $0x49] sm:$0xff]  ;;  %294 = vst.msk [vmem:[#allocation2 + $0x31] sm:$0xff] %vm287_vm0, %v325_v37  ;;  %v506_v42 = vld [vmem:[%s2702_s27 + $0x31] sm:$0xff]  ;;  %v331_v51 = vld [vmem:[%s2702_s27 + $0x60] sm:$0xff]  ;;  %1080 = vmatpush.msrb.mxu2 %v2435_v55 }
  0x1c   : > { %289 = vst.msk [vmem:[#allocation2 + $0x9] sm:$0xff] %vm287_vm0, %v320_v22  ;;  %v329_v45 = vld [vmem:[%s2702_s27 + $0x50] sm:$0xff]  ;;  %v330_v49 = vld [vmem:[%s2702_s27 + $0x58] sm:$0xff]  ;;  %v332_v54 = vld [vmem:[%s2702_s27 + $0x68] sm:$0xff] }
  0x1d   : > { %291 = vst.msk [vmem:[#allocation2 + $0x19] sm:$0xff] %vm287_vm0, %v322_v36  ;;  %v510_v48 = vld [vmem:[%s2702_s27 + $0x51] sm:$0xff]  ;;  %v511_v52 = vld [vmem:[%s2702_s27 + $0x59] sm:$0xff]  ;;  %v512_v56 = vld [vmem:[%s2702_s27 + $0x61] sm:$0xff] }
  0x1e   : > { %292 = vst.msk [vmem:[#allocation2 + $0x21] sm:$0xff] %vm287_vm0, %v2763_v23  ;;  %v333_v53 = vld [vmem:[%s2702_s27 + $0x70] sm:$0xff]  ;;  %v2434_v1 = vld [vmem:[%s3710_s1 + $0x78] sm:$0xff] }
  0x1f   : > { %598 = vrot.lane.b32.xlu1 %v519_v6, %s2647_s29  ;;  %417 = vrot.lane.b32.xlu0 %v2727_v7, %s2646_s28  ;;  %296 = vst.msk [vmem:[#allocation2 + $0x41] sm:$0xff] %vm287_vm0, %v327_v26  ;;  %v513_v60 = vld [vmem:[%s2702_s27 + $0x69] sm:$0xff]  ;;  %v514_v62 = vld [vmem:[%s2702_s27 + $0x71] sm:$0xff] }
  0x20   : > { %419 = vrot.lane.b32.xlu2 %v339_v8, %s2646_s28  ;;  %290 = vst.msk [vmem:[#allocation2 + $0x11] sm:$0xff] %vm287_vm0, %v321_v28  ;;  %v515_v2 = vld [vmem:[%s2702_s27 + $0x79] sm:$0xff]  ;;  %1081 = vmatpush.msrb.mxu2 %v2434_v1  ;;  %v345_v1 = vld [vmem:[%s2702_s27 + $0xd0] sm:$0xff] }
  0x21   : > { %293 = vst.msk [vmem:[#allocation2 + $0x29] sm:$0xff] %vm287_vm0, %v324_v29 }
  0x22   : > { %297 = vst.msk [vmem:[#allocation2 + $0x49] sm:$0xff] %vm287_vm0, %v328_v32 }
  0x23   : > { %298 = vst.msk [vmem:[#allocation2 + $0x51] sm:$0xff] %vm287_vm0, %v329_v45 }
  0x24   : > { %299 = vst.msk [vmem:[#allocation2 + $0x59] sm:$0xff] %vm287_vm0, %v330_v49 }
  0x25   : > { %300 = vst.msk [vmem:[#allocation2 + $0x61] sm:$0xff] %vm287_vm0, %v331_v51 }
  0x26   : > { %302 = vst.msk [vmem:[#allocation2 + $0x71] sm:$0xff] %vm287_vm0, %v333_v53 }
  0x27   : > { %421 = vrot.lane.b32.xlu1 %v340_v9, %s2646_s28  ;;  %600 = vrot.lane.b32.xlu0 %v520_v10, %s2647_s29  ;;  %301 = vst.msk [vmem:[#allocation2 + $0x69] sm:$0xff] %vm287_vm0, %v332_v54 }
  0x28   : > { %602 = vrot.lane.b32.xlu2 %v521_v11, %s2647_s29  ;;  %v257_v11 = vld [vmem:[%s2702_s27] sm:$0xff]  ;;  %314 = vst.msk [vmem:[#allocation2 + $0xd1] sm:$0xff] %vm287_vm0, %v345_v1 }
  0x29   : > { %288 = vst.msk [vmem:[#allocation2 + $0x1] sm:$0xff] %vm287_vm0, %v257_v11  ;;  %v527_v11 = vld [vmem:[%s2702_s27 + $0xd9] sm:$0xff] }
  0x2f   : > { %604 = vrot.lane.b32.xlu1 %v522_v12, %s2647_s29  ;;  %423 = vrot.lane.b32.xlu0 %v341_v13, %s2646_s28  ;;  %v2433_v12 = vld [vmem:[%s3710_s1 + $0x70] sm:$0xff] }
  0x30   : > { %425 = vrot.lane.b32.xlu2 %v342_v14, %s2646_s28  ;;  %1082 = vmatpush.msrb.mxu2 %v2433_v12  ;;  %v1401_v12 = vld [vmem:[%s3714_s5 + $0x20] sm:$0xff] }
  0x37   : > { %427 = vrot.lane.b32.xlu1 %v343_v15, %s2646_s28  ;;  %606 = vrot.lane.b32.xlu0 %v523_v16, %s2647_s29 }
  0x38   : > { %608 = vrot.lane.b32.xlu2 %v524_v17, %s2647_s29  ;;  %v2432_v17 = vld [vmem:[%s3710_s1 + $0x68] sm:$0xff] }
  0x39   : > { %1083 = vmatpush.msrb.mxu2 %v2432_v17  ;;  %v1398_v17 = vld [vmem:[%s3714_s5 + $0x8] sm:$0xff] }
  0x3f   : > { %610 = vrot.lane.b32.xlu1 %v525_v18, %s2647_s29  ;;  %429 = vrot.lane.b32.xlu0 %v344_v19, %s2646_s28 }
  0x40   : > { %393 = vrot.lane.b32.xlu2 %v326_v20, %s2646_s28 }
  0x47   : > { %574 = vrot.lane.b32.xlu0 %v507_v21, %s2647_s29  ;;  %381 = vrot.lane.b32.xlu1 %v320_v22, %s2646_s28  ;;  %v721_v22 = vld [vmem:[%s3710_s1 + $0x28] sm:$0xff] }
  0x48   : > { %387 = vrot.lane.b32.xlu2 %v2763_v23, %s2646_s28  ;;  %v720_v23 = vld [vmem:[%s3710_s1 + $0x20] sm:$0xff]  ;;  %901 = vmatpush.msra.mxu1 %v721_v22 }
  0x49   : > { %2557 = vmatpush.msra.mxu3 %v721_v22 }
  0x4a   : > { %902 = vmatpush.msra.mxu1 %v720_v23 }
  0x4b   : > { %2558 = vmatpush.msra.mxu3 %v720_v23 }
  0x4f   : > { %562 = vrot.lane.b32.xlu0 %v501_v24, %s2647_s29  ;;  %568 = vrot.lane.b32.xlu1 %v504_v25, %s2647_s29  ;;  %v719_v25 = vld [vmem:[%s3710_s1 + $0x18] sm:$0xff] }
  0x50   : > { %395 = vrot.lane.b32.xlu2 %v327_v26, %s2646_s28  ;;  %v718_v26 = vld [vmem:[%s3710_s1 + $0x10] sm:$0xff]  ;;  %903 = vmatpush.msra.mxu1 %v719_v25 }
  0x51   : > { %2559 = vmatpush.msra.mxu3 %v719_v25 }
  0x52   : > { %904 = vmatpush.msra.mxu1 %v718_v26 }
  0x53   : > { %2560 = vmatpush.msra.mxu3 %v718_v26  ;;  %v1400_v26 = vld [vmem:[%s3714_s5 + $0x18] sm:$0xff] }
  0x57   : > { %576 = vrot.lane.b32.xlu0 %v508_v27, %s2647_s29  ;;  %383 = vrot.lane.b32.xlu1 %v321_v28, %s2646_s28 }
  0x58   : > { %389 = vrot.lane.b32.xlu2 %v324_v29, %s2646_s28 }
  0x5f   : > { %564 = vrot.lane.b32.xlu0 %v502_v30, %s2647_s29  ;;  %570 = vrot.lane.b32.xlu1 %v505_v31, %s2647_s29  ;;  %v717_v30 = vld [vmem:[%s3710_s1 + $0x8] sm:$0xff]  ;;  %v716_v31 = vld [vmem:[%s3710_s1] sm:$0xff] }
  0x60   : > { %397 = vrot.lane.b32.xlu2 %v328_v32, %s2646_s28  ;;  %905 = vmatpush.msra.mxu1 %v717_v30 }
  0x61   : > { %2561 = vmatpush.msra.mxu3 %v717_v30 }
  0x62   : > { %906 = vmatpush.msra.mxu1 %v716_v31 }
  0x63   : > { %2562 = vmatpush.msra.mxu3 %v716_v31 }
  0x67   : > { %578 = vrot.lane.b32.xlu0 %v509_v35, %s2647_s29  ;;  %385 = vrot.lane.b32.xlu1 %v322_v36, %s2646_s28 }
  0x68   : > { %391 = vrot.lane.b32.xlu2 %v325_v37, %s2646_s28 }
  0x6a   : > { %v416_v43 = vpop.permute.xlu2 %415 }
  0x6b   : > { %488 = vst.msk [vmem:[#allocation2 + $0x90] sm:$0xff] %vm469_vm1, %v416_v43 }
  0x6f   : > { %566 = vrot.lane.b32.xlu0 %v503_v41, %s2647_s29  ;;  %572 = vrot.lane.b32.xlu1 %v506_v42, %s2647_s29 }
  0x70   : > { %399 = vrot.lane.b32.xlu2 %v329_v45, %s2646_s28 }
  0x72   : > { %v597_v50 = vpop.permute.xlu2 %596 }
  0x73   : > { %669 = vst.msk [vmem:[#allocation2 + $0x90] sm:$0xff] %vm650_vm2, %v597_v50 }
  0x77   : > { %580 = vrot.lane.b32.xlu0 %v510_v48, %s2647_s29  ;;  %401 = vrot.lane.b32.xlu1 %v330_v49, %s2646_s28 }
  0x78   : > { %582 = vrot.lane.b32.xlu2 %v511_v52, %s2647_s29 }
  0x7a   : > { %v420_v57 = vpop.permute.xlu2 %419  ;;  %v2907_v14 = vld [vmem:[#allocation2 + $0x90] sm:$0xff] }
  0x7b   : > { %490 = vst.msk [vmem:[#allocation2 + $0xa0] sm:$0xff] %vm469_vm1, %v420_v57 }
  0x7f   : > { %403 = vrot.lane.b32.xlu0 %v331_v51, %s2646_s28  ;;  %584 = vrot.lane.b32.xlu1 %v512_v56, %s2647_s29  ;;  %v346_v51 = vld [vmem:[%s2702_s27 + $0xd8] sm:$0xff] }
  0x80   : > { %405 = vrot.lane.b32.xlu2 %v332_v54, %s2646_s28  ;;  %315 = vst.msk [vmem:[#allocation2 + $0xd9] sm:$0xff] %vm287_vm0, %v346_v51 }
  0x81   : > { %v414_v58 = vpop.permute.xlu1 %413  ;;  %v412_v59 = vpop.permute.xlu0 %411 }
  0x82   : > { %487 = vst.msk [vmem:[#allocation2 + $0x88] sm:$0xff] %vm469_vm1, %v414_v58  ;;  %v603_v61 = vpop.permute.xlu2 %602 }
  0x83   : > { %486 = vst.msk [vmem:[#allocation2 + $0x80] sm:$0xff] %vm469_vm1, %v412_v59  ;;  %v528_v59 = vld [vmem:[%s2702_s27 + $0xe1] sm:$0xff] }
  0x87   : > { %586 = vrot.lane.b32.xlu0 %v513_v60, %s2647_s29  ;;  %407 = vrot.lane.b32.xlu1 %v333_v53, %s2646_s28  ;;  %v526_v60 = vld [vmem:[%s2702_s27 + $0xd1] sm:$0xff] }
  0x88   : > { %588 = vrot.lane.b32.xlu2 %v514_v62, %s2647_s29 }
  0x89   : > { %v595_v63 = vpop.permute.xlu1 %594  ;;  %v593_v0 = vpop.permute.xlu0 %592 }
  0x8a   : > { %668 = vst.msk [vmem:[#allocation2 + $0x88] sm:$0xff] %vm650_vm2, %v595_v63  ;;  %v426_v3 = vpop.permute.xlu2 %425 }
  0x8b   : > { %667 = vst.msk [vmem:[#allocation2 + $0x80] sm:$0xff] %vm650_vm2, %v593_v0  ;;  %v2648_v0 = vmov 0  }
  0x8c   : > { %493 = vst.msk [vmem:[#allocation2 + $0xb8] sm:$0xff] %vm469_vm1, %v426_v3  ;;  %2590 = vset.pattern.permute.xlu1 %v2648_v0  ;;  %2589 = vset.pattern.permute.xlu0 %v2648_v0 }
  0x8d   : > { %2588 = vset.pattern.permute.xlu2 %v2648_v0 }
  0x8f   : > { %409 = vrot.lane.b32.xlu0 %v2787_v33, %s2646_s28  ;;  %590 = vrot.lane.b32.xlu1 %v515_v2, %s2647_s29  ;;  %v2431_v33 = vld [vmem:[%s3710_s1 + $0x60] sm:$0xff]  ;;  %v1399_v2 = vld [vmem:[%s3714_s5 + $0x10] sm:$0xff] }
  0x90   : > { %1084 = vmatpush.msrb.mxu2 %v2431_v33  ;;  %431 = vrot.lane.b32.xlu2 %v345_v1, %s2646_s28  ;;  %v1402_v33 = vld [vmem:[%s3714_s5 + $0x28] sm:$0xff] }
  0x91   : > { %v599_v4 = vpop.permute.xlu1 %598  ;;  %v418_v5 = vpop.permute.xlu0 %417  ;;  %v2894_v8 = vld [vmem:[#allocation2 + $0x88] sm:$0xff] }
  0x92   : > { %489 = vst.msk [vmem:[#allocation2 + $0x98] sm:$0xff] %vm469_vm1, %v418_v5  ;;  %v2889_v6 = vld [vmem:[#allocation2 + $0x80] sm:$0xff]  ;;  %v609_v7 = vpop.permute.xlu2 %608 }
  0x93   : > { %670 = vst.msk [vmem:[#allocation2 + $0x98] sm:$0xff] %vm650_vm2, %v599_v4  ;;  %2399 = vmatmul.msk.f32.vlgmr.msra.gmra.mxu2 %vm732_vm3, %v2889_v6 }
  0x97   : > { %433 = vrot.lane.b32.xlu1 %v346_v51, %s2646_s28  ;;  %612 = vrot.lane.b32.xlu0 %v526_v60, %s2647_s29 }
  0x98   : > { %614 = vrot.lane.b32.xlu2 %v527_v11, %s2647_s29 }
  0x99   : > { %v422_v9 = vpop.permute.xlu1 %421  ;;  %v601_v10 = vpop.permute.xlu0 %600 }
  0x9a   : > { %491 = vst.msk [vmem:[#allocation2 + $0xa8] sm:$0xff] %vm469_vm1, %v422_v9  ;;  %v394_v13 = vpop.permute.xlu2 %393  ;;  %v2918_v21 = vld [vmem:[#allocation2 + $0x98] sm:$0xff] }
  0x9b   : > { %671 = vst.msk [vmem:[#allocation2 + $0xa0] sm:$0xff] %vm650_vm2, %v601_v10  ;;  %2400 = vmatmul.msk.f32.gmra.mxu2 %vm732_vm3, %v2894_v8  ;;  %v347_v10 = vld [vmem:[%s2702_s27 + $0xe0] sm:$0xff] }
  0x9c   : > { %672 = vst.msk [vmem:[#allocation2 + $0xa8] sm:$0xff] %vm650_vm2, %v603_v61 }
  0x9d   : > { %477 = vst.msk [vmem:[#allocation2 + $0x38] sm:$0xff] %vm469_vm1, %v394_v13 }
  0x9e   : > { %316 = vst.msk [vmem:[#allocation2 + $0xe1] sm:$0xff] %vm287_vm0, %v347_v10 }
  0x9f   : > { %616 = vrot.lane.b32.xlu1 %v528_v59, %s2647_s29  ;;  %435 = vrot.lane.b32.xlu0 %v347_v10, %s2646_s28 }
  0xa1   : > { %v605_v15 = vpop.permute.xlu1 %604  ;;  %v424_v16 = vpop.permute.xlu0 %423 }
  0xa2   : > { %492 = vst.msk [vmem:[#allocation2 + $0xb0] sm:$0xff] %vm469_vm1, %v424_v16  ;;  %v388_v18 = vpop.permute.xlu2 %387  ;;  %v2938_v29 = vld [vmem:[#allocation2 + $0xa0] sm:$0xff] }
  0xa3   : > { %673 = vst.msk [vmem:[#allocation2 + $0xb0] sm:$0xff] %vm650_vm2, %v605_v15  ;;  %2401 = vmatmul.msk.f32.gmra.mxu2 %vm732_vm3, %v2907_v14  ;;  %v2954_v36 = vld [vmem:[#allocation2 + $0xa8] sm:$0xff] }
  0xa4   : > { %474 = vst.msk [vmem:[#allocation2 + $0x20] sm:$0xff] %vm469_vm1, %v388_v18  ;;  %v1397_v18 = vld [vmem:[%s3714_s5] sm:$0xff] }
  0xa5   : > { %1421 = vperm.xlu2 %2588, %v1397_v18  }
  0xa7   : > { %1431 = vperm.xlu1 %2590, %v1399_v2   ;;  %1426 = vperm.xlu0 %2589, %v1398_v17  }
  0xa9   : > { %v428_v19 = vpop.permute.xlu1 %427  ;;  %v607_v20 = vpop.permute.xlu0 %606 }
  0xaa   : > { %494 = vst.msk [vmem:[#allocation2 + $0xc0] sm:$0xff] %vm469_vm1, %v428_v19  ;;  %v396_v24 = vpop.permute.xlu2 %395  ;;  %v2961_v40 = vld [vmem:[#allocation2 + $0xb0] sm:$0xff]  ;;  %v1404_v19 = vld [vmem:[%s3714_s5 + $0x38] sm:$0xff] }
  0xab   : > { %674 = vst.msk [vmem:[#allocation2 + $0xb8] sm:$0xff] %vm650_vm2, %v607_v20  ;;  %2402 = vmatmul.msk.f32.gmra.mxu2 %vm732_vm3, %v2918_v21 }
  0xac   : > { %675 = vst.msk [vmem:[#allocation2 + $0xc0] sm:$0xff] %vm650_vm2, %v609_v7 }
  0xad   : > { %478 = vst.msk [vmem:[#allocation2 + $0x40] sm:$0xff] %vm469_vm1, %v396_v24  ;;  %1436 = vperm.xlu2 %2588, %v1400_v26  }
  0xaf   : > { %1441 = vperm.xlu1 %2590, %v1401_v12  }
  0xb1   : > { %v611_v27 = vpop.permute.xlu1 %610  ;;  %v430_v28 = vpop.permute.xlu0 %429 }
  0xb2   : > { %495 = vst.msk [vmem:[#allocation2 + $0xc8] sm:$0xff] %vm469_vm1, %v430_v28  ;;  %v390_v32 = vpop.permute.xlu2 %389  ;;  %v2968_v45 = vld [vmem:[#allocation2 + $0xb8] sm:$0xff] }
  0xb3   : > { %676 = vst.msk [vmem:[#allocation2 + $0xc8] sm:$0xff] %vm650_vm2, %v611_v27  ;;  %2403 = vmatmul.msk.f32.gmra.mxu2 %vm732_vm3, %v2938_v29  ;;  %v2980_v50 = vld [vmem:[#allocation2 + $0xc0] sm:$0xff]  ;;  %v1406_v27 = vld [vmem:[%s3714_s5 + $0x48] sm:$0xff] }
  0xb4   : > { %475 = vst.msk [vmem:[#allocation2 + $0x28] sm:$0xff] %vm469_vm1, %v390_v32 }
  0xb5   : > { %1446 = vperm.xlu2 %2588, %v1402_v33  }
  0xb7   : > { %1456 = vperm.xlu1 %2590, %v1404_v19  }
  0xb9   : > { %v575_v34 = vpop.permute.xlu0 %574  ;;  %v382_v35 = vpop.permute.xlu1 %381 }
  0xba   : > { %658 = vst.msk [vmem:[#allocation2 + $0x38] sm:$0xff] %vm650_vm2, %v575_v34  ;;  %v398_v37 = vpop.permute.xlu2 %397  ;;  %v2989_v56 = vld [vmem:[#allocation2 + $0xc8] sm:$0xff] }
  0xbb   : > { %471 = vst.msk [vmem:[#allocation2 + $0x8] sm:$0xff] %vm469_vm1, %v382_v35  ;;  %2404 = vmatmul.msk.f32.gmra.mxu2 %vm732_vm3, %v2954_v36  ;;  %v1405_v35 = vld [vmem:[%s3714_s5 + $0x40] sm:$0xff] }
  0xbc   : > { %479 = vst.msk [vmem:[#allocation2 + $0x48] sm:$0xff] %vm469_vm1, %v398_v37 }
  0xbd   : > { %1461 = vperm.xlu2 %2588, %v1405_v35  }
  0xbf   : > { %1466 = vperm.xlu1 %2590, %v1406_v27  }
  0xc1   : > { %v563_v38 = vpop.permute.xlu0 %562  ;;  %v569_v39 = vpop.permute.xlu1 %568  ;;  %v3005_v63 = vld [vmem:[#allocation2 + $0x38] sm:$0xff] }
  0xc2   : > { %652 = vst.msk [vmem:[#allocation2 + $0x8] sm:$0xff] %vm650_vm2, %v563_v38  ;;  %v392_v41 = vpop.permute.xlu2 %391 }
  0xc3   : > { %655 = vst.msk [vmem:[#allocation2 + $0x20] sm:$0xff] %vm650_vm2, %v569_v39  ;;  %2405 = vmatmul.msk.f32.gmra.mxu2 %vm732_vm3, %v2961_v40  ;;  %v1403_v39 = vld [vmem:[%s3714_s5 + $0x30] sm:$0xff] }
  0xc4   : > { %476 = vst.msk [vmem:[#allocation2 + $0x30] sm:$0xff] %vm469_vm1, %v392_v41  ;;  %1451 = vperm.xlu0 %2589, %v1403_v39  }
  0xc9   : > { %v577_v42 = vpop.permute.xlu0 %576  ;;  %v384_v43 = vpop.permute.xlu1 %383  ;;  %v694_v44 = vld [vmem:[#allocation2 + $0x8] sm:$0xff] }
  0xca   : > { %659 = vst.msk [vmem:[#allocation2 + $0x40] sm:$0xff] %vm650_vm2, %v577_v42  ;;  %v2970_v46 = vld [vmem:[#allocation2 + $0x20] sm:$0xff]  ;;  %2409 = vmatmul.msk.f32.vlgmr.msra.gmra.mxu1 %vm732_vm3, %v694_v44  ;;  %v400_v47 = vpop.permute.xlu2 %399 }
  0xcb   : > { %472 = vst.msk [vmem:[#allocation2 + $0x10] sm:$0xff] %vm469_vm1, %v384_v43  ;;  %2406 = vmatmul.msk.f32.gmra.mxu2 %vm732_vm3, %v2968_v45  ;;  %2387 = vmatmul.msk.f32.vlgmr.msra.gmra.mxu0 %vm732_vm3, %v2970_v46 }
  0xcc   : > { %480 = vst.msk [vmem:[#allocation2 + $0x50] sm:$0xff] %vm469_vm1, %v400_v47 }
  0xd1   : > { %v565_v48 = vpop.permute.xlu0 %564  ;;  %v571_v49 = vpop.permute.xlu1 %570  ;;  %v975_v9 = vld [vmem:[#allocation2 + $0x40] sm:$0xff] }
  0xd2   : > { %653 = vst.msk [vmem:[#allocation2 + $0x10] sm:$0xff] %vm650_vm2, %v565_v48  ;;  %v583_v52 = vpop.permute.xlu2 %582 }
  0xd3   : > { %656 = vst.msk [vmem:[#allocation2 + $0x28] sm:$0xff] %vm650_vm2, %v571_v49  ;;  %2407 = vmatmul.msk.f32.gmra.mxu2 %vm732_vm3, %v2980_v50 }
  0xd9   : > { %v579_v53 = vpop.permute.xlu0 %578  ;;  %v386_v54 = vpop.permute.xlu1 %385  ;;  %v695_v55 = vld [vmem:[#allocation2 + $0x10] sm:$0xff] }
  0xda   : > { %660 = vst.msk [vmem:[#allocation2 + $0x48] sm:$0xff] %vm650_vm2, %v579_v53  ;;  %v2991_v57 = vld [vmem:[#allocation2 + $0x28] sm:$0xff]  ;;  %2410 = vmatmul.msk.f32.gmra.mxu1 %vm732_vm3, %v695_v55  ;;  %v406_v58 = vpop.permute.xlu2 %405 }
  0xdb   : > { %473 = vst.msk [vmem:[#allocation2 + $0x18] sm:$0xff] %vm469_vm1, %v386_v54  ;;  %2408 = vmatmul.msk.f32.gmra.mxu2 %vm732_vm3, %v2989_v56  ;;  %2388 = vmatmul.msk.f32.gmra.mxu0 %vm732_vm3, %v2991_v57 }
  0xdc   : > { %483 = vst.msk [vmem:[#allocation2 + $0x68] sm:$0xff] %vm469_vm1, %v406_v58  ;;  %v3152_v58 = vld [vmem:[%s3711_s2] ss:$0 sm:$0xff] }
  0xe1   : > { %v567_v61 = vpop.permute.xlu0 %566  ;;  %v573_v62 = vpop.permute.xlu1 %572  ;;  %v976_v16 = vld [vmem:[#allocation2 + $0x48] sm:$0xff] }
  0xe2   : > { %654 = vst.msk [vmem:[#allocation2 + $0x18] sm:$0xff] %vm650_vm2, %v567_v61  ;;  %v589_v22 = vpop.permute.xlu2 %588 }
  0xe3   : > { %657 = vst.msk [vmem:[#allocation2 + $0x30] sm:$0xff] %vm650_vm2, %v573_v62  ;;  %2437 = vmatmul.msk.f32.vlgmr.msrb.gmra.mxu2 %vm732_vm3, %v3005_v63 }
  0xe9   : > { %v581_v3 = vpop.permute.xlu0 %580  ;;  %v402_v4 = vpop.permute.xlu1 %401  ;;  %v696_v5 = vld [vmem:[#allocation2 + $0x18] sm:$0xff] }
  0xea   : > { %661 = vst.msk [vmem:[#allocation2 + $0x50] sm:$0xff] %vm650_vm2, %v581_v3  ;;  %v699_v7 = vld [vmem:[#allocation2 + $0x30] sm:$0xff]  ;;  %2411 = vmatmul.msk.f32.gmra.mxu1 %vm732_vm3, %v696_v5 }
  0xeb   : > { %481 = vst.msk [vmem:[#allocation2 + $0x58] sm:$0xff] %vm469_vm1, %v402_v4  ;;  %2389 = vmatmul.msk.f32.gmra.mxu0 %vm732_vm3, %v699_v7  ;;  %2438 = vmatmul.msk.f32.gmra.mxu2 %vm732_vm3, %v975_v9 }
  0xec   : > { %662 = vst.msk [vmem:[#allocation2 + $0x58] sm:$0xff] %vm650_vm2, %v583_v52 }
  0xf1   : > { %v404_v13 = vpop.permute.xlu0 %403  ;;  %v585_v15 = vpop.permute.xlu1 %584  ;;  %v977_v20 = vld [vmem:[#allocation2 + $0x50] sm:$0xff] }
  0xf2   : > { %482 = vst.msk [vmem:[#allocation2 + $0x60] sm:$0xff] %vm469_vm1, %v404_v13  ;;  %2412 = vmatmul.msk.f32.gmra.mxu1 %vm732_vm3, %v2970_v46  ;;  %v432_v46 = vpop.permute.xlu2 %431 }
  0xf3   : > { %663 = vst.msk [vmem:[#allocation2 + $0x60] sm:$0xff] %vm650_vm2, %v585_v15  ;;  %2390 = vmatmul.msk.f32.gmra.mxu0 %vm732_vm3, %v3005_v63  ;;  %2439 = vmatmul.msk.f32.gmra.mxu2 %vm732_vm3, %v976_v16  ;;  %v978_v28 = vld [vmem:[#allocation2 + $0x58] sm:$0xff] }
  0xf4   : > { %496 = vst.msk [vmem:[#allocation2 + $0xd0] sm:$0xff] %vm469_vm1, %v432_v46 }
  0xf9   : > { %v587_v23 = vpop.permute.xlu0 %586  ;;  %v408_v24 = vpop.permute.xlu1 %407 }
  0xfa   : > { %664 = vst.msk [vmem:[#allocation2 + $0x68] sm:$0xff] %vm650_vm2, %v587_v23  ;;  %2413 = vmatmul.msk.f32.gmra.mxu1 %vm732_vm3, %v2991_v57  ;;  %v705_v25 = vld [vmem:[#allocation2 + $0x60] sm:$0xff]  ;;  %v615_v48 = vpop.permute.xlu2 %614 }
  0xfb   : > { %2391 = vmatmul.msk.f32.gmra.mxu0 %vm732_vm3, %v975_v9  ;;  %2440 = vmatmul.msk.f32.gmra.mxu2 %vm732_vm3, %v977_v20  ;;  %484 = vst.msk [vmem:[#allocation2 + $0x70] sm:$0xff] %vm469_vm1, %v408_v24 }
  0xfc   : > { %2420 = vmatmul.msk.f32.vlgmr.msra.gmra.mxu3 %vm732_vm3, %v705_v25  ;;  %665 = vst.msk [vmem:[#allocation2 + $0x70] sm:$0xff] %vm650_vm2, %v589_v22 }
 0x101   : > { %v706_v30 = vld [vmem:[#allocation2 + $0x68] sm:$0xff]  ;;  %v410_v31 = vpop.permute.xlu0 %409  ;;  %v591_v32 = vpop.permute.xlu1 %590 }
 0x102   : > { %2414 = vmatmul.msk.f32.gmra.mxu1 %vm732_vm3, %v699_v7  ;;  %485 = vst.msk [vmem:[#allocation2 + $0x78] sm:$0xff] %vm469_vm1, %v410_v31 }
 0x103   : > { %2392 = vmatmul.msk.f32.gmra.mxu0 %vm732_vm3, %v976_v16  ;;  %2441 = vmatmul.msk.f32.gmra.mxu2 %vm732_vm3, %v978_v28  ;;  %666 = vst.msk [vmem:[#allocation2 + $0x78] sm:$0xff] %vm650_vm2, %v591_v32  ;;  %v707_v34 = vld [vmem:[#allocation2 + $0x70] sm:$0xff]  ;;  %v1422_v32 = vpop.permute.xlu2 %1421 }
 0x104   : > { %2421 = vmatmul.msk.f32.gmra.mxu3 %vm732_vm3, %v706_v30 }
 0x109   : > { %v434_v47 = vpop.permute.xlu1 %433 }
 0x10a   : > { %2415 = vmatmul.msk.f32.gmra.mxu1 %vm732_vm3, %v3005_v63  ;;  %v708_v37 = vld [vmem:[#allocation2 + $0x78] sm:$0xff]  ;;  %497 = vst.msk [vmem:[#allocation2 + $0xd8] sm:$0xff] %vm469_vm1, %v434_v47 }
 0x10b   : > { %2393 = vmatmul.msk.f32.gmra.mxu0 %vm732_vm3, %v977_v20  ;;  %2442 = vmatmul.msk.f32.gmra.mxu2 %vm732_vm3, %v705_v25  ;;  %678 = vst.msk [vmem:[#allocation2 + $0xd8] sm:$0xff] %vm650_vm2, %v615_v48 }
 0x10c   : > { %2422 = vmatmul.msk.f32.gmra.mxu3 %vm732_vm3, %v707_v34 }
 0x111   : > { %v617_v57 = vpop.permute.xlu1 %616 }
 0x112   : > { %2416 = vmatmul.msk.f32.gmra.mxu1 %vm732_vm3, %v975_v9 }
 0x113   : > { %2394 = vmatmul.msk.f32.gmra.mxu0 %vm732_vm3, %v978_v28  ;;  %2443 = vmatmul.msk.f32.gmra.mxu2 %vm732_vm3, %v706_v30 }
 0x114   : > { %2423 = vmatmul.msk.f32.gmra.mxu3 %vm732_vm3, %v708_v37 }
 0x116   : > { %v3081_v38 = vpop.f32.mrf.mxu2 }
 0x11a   : > { %2417 = vmatmul.msk.f32.gmra.mxu1 %vm732_vm3, %v976_v16 }
 0x11b   : > { %2395 = vmatmul.msk.f32.gmra.mxu0 %vm732_vm3, %v705_v25  ;;  %2444 = vmatmul.msk.f32.gmra.mxu2 %vm732_vm3, %v707_v34 }
 0x11c   : > { %2424 = vmatmul.msk.f32.gmra.mxu3 %vm732_vm3, %v2889_v6 }
 0x11e   : > { %v3091_v41 = vpop.f32.mrf.mxu2 }
 0x122   : > { %2418 = vmatmul.msk.f32.gmra.mxu1 %vm732_vm3, %v977_v20 }
 0x123   : > { %2396 = vmatmul.msk.f32.gmra.mxu0 %vm732_vm3, %v706_v30  ;;  %2445 = vmatmul.msk.f32.gmra.mxu2 %vm732_vm3, %v708_v37 }
 0x124   : > { %2425 = vmatmul.msk.f32.gmra.mxu3 %vm732_vm3, %v2894_v8 }
 0x126   : > { %v3098_v42 = vpop.f32.mrf.mxu2 }
 0x12a   : > { %2419 = vmatmul.msk.f32.gmra.mxu1 %vm732_vm3, %v978_v28 }
 0x12b   : > { %2397 = vmatmul.msk.f32.gmra.mxu0 %vm732_vm3, %v707_v34  ;;  %2446 = vmatmul.msk.f32.gmra.mxu2 %vm732_vm3, %v2889_v6 }
 0x12c   : > { %2426 = vmatmul.msk.f32.gmra.mxu3 %vm732_vm3, %v2907_v14 }
 0x12e   : > { %v3106_v43 = vpop.f32.mrf.mxu2 }
 0x133   : > { %2447 = vmatmul.msk.f32.gmra.mxu2 %vm732_vm3, %v2894_v8  ;;  %2398 = vmatmul.msk.f32.gmra.mxu0 %vm732_vm3, %v708_v37  ;;  %v994_v37 = vld [vmem:[#allocation2 + $0xd8] sm:$0xff] }
 0x134   : > { %2427 = vmatmul.msk.f32.gmra.mxu3 %vm732_vm3, %v2918_v21 }
 0x136   : > { %v3113_v44 = vpop.f32.mrf.mxu2 }
 0x13b   : > { %2448 = vmatmul.msk.f32.gmra.mxu2 %vm732_vm3, %v2907_v14 }
 0x13c   : > { %2428 = vmatmul.msk.f32.gmra.mxu3 %vm732_vm3, %v2938_v29 }
 0x13e   : > { %v3119_v6 = vpop.f32.mrf.mxu2 }
 0x143   : > { %2449 = vmatmul.msk.f32.gmra.mxu2 %vm732_vm3, %v2918_v21  ;;  %v613_v21 = vpop.permute.xlu0 %612 }
 0x144   : > { %2429 = vmatmul.msk.f32.gmra.mxu3 %vm732_vm3, %v2954_v36  ;;  %677 = vst.msk [vmem:[#allocation2 + $0xd0] sm:$0xff] %vm650_vm2, %v613_v21 }
 0x146   : > { %v3126_v8 = vpop.f32.mrf.mxu2 }
 0x147   : > { %v908_v49 = vpop.f32.mrf.mxu1 }
 0x148   : > { %v816_v51 = vpop.f32.mrf.mxu0 }
 0x14b   : > { %2450 = vmatmul.msk.f32.gmra.mxu2 %vm732_vm3, %v2938_v29  ;;  %v436_v55 = vpop.permute.xlu0 %435  ;;  %v993_v19 = vld [vmem:[#allocation2 + $0xd0] sm:$0xff] }
 0x14c   : > { %2430 = vmatmul.msk.f32.gmra.mxu3 %vm732_vm3, %v2961_v40  ;;  %498 = vst.msk [vmem:[#allocation2 + $0xe0] sm:$0xff] %vm469_vm1, %v436_v55 }
 0x14d   : > { %679 = vst.msk [vmem:[#allocation2 + $0xe0] sm:$0xff] %vm650_vm2, %v617_v57 }
 0x14e   : > { %v3134_v14 = vpop.f32.mrf.mxu2 }
 0x153   : > { %2451 = vmatmul.msk.f32.gmra.mxu2 %vm732_vm3, %v2954_v36  ;;  %v909_v36 = vadd.f32 %v908_v49, %v816_v51  ;;  %v1427_v57 = vpop.permute.xlu0 %1426 }
 0x156   : > { %v3139_v52 = vpop.f32.mrf.mxu2 }
 0x157   : > { %v911_v53 = vpop.f32.mrf.mxu1 }
 0x158   : > { %v819_v54 = vpop.f32.mrf.mxu0 }
 0x159   : > { %v912_v0 = vadd.f32 %v911_v53, %v819_v54 }
 0x15b   : > { %2452 = vmatmul.msk.f32.gmra.mxu2 %vm732_vm3, %v2961_v40 }
 0x15e   : > { %v3143_v29 = vpop.f32.mrf.mxu2 }
 0x163   : > { %2453 = vmatmul.msk.f32.gmra.mxu2 %vm732_vm3, %v2968_v45 }
 0x166   : > { %v1086_v40 = vpop.f32.mrf.mxu2 }
 0x167   : > { %v1152_v59 = vadd.f32 %v1086_v40, %v909_v36  ;;  %v914_v60 = vpop.f32.mrf.mxu1 }
 0x168   : > { %v822_v61 = vpop.f32.mrf.mxu0 }
 0x169   : > { %v1177_v62 = vadd.f32 %v3152_v58, %v1152_v59  ;;  %v915_v10 = vadd.f32 %v914_v60, %v822_v61 }
 0x16b   : > { %2454 = vmatmul.msk.f32.gmra.mxu2 %vm732_vm3, %v2980_v50  ;;  %v1221_v63 = vmul.f32 0.044715, %v1177_v62  ;;  %v1199_v26 = vmul.f32 0.5, %v1177_v62 }
 0x16d   : > { %v1243_v1 = vmul.f32 %v1221_v63, %v1177_v62  ;;  %v995_v63 = vld [vmem:[#allocation2 + $0xe0] sm:$0xff] }
 0x16e   : > { %v1089_v2 = vpop.f32.mrf.mxu2 }
 0x16f   : > { %v1153_v45 = vadd.f32 %v1089_v2, %v912_v0  ;;  %v1265_v3 = vmul.f32 %v1243_v1, %v1177_v62  ;;  %v917_v4 = vpop.f32.mrf.mxu1 }
 0x170   : > { %v825_v5 = vpop.f32.mrf.mxu0 }
 0x171   : > { %v1178_v7 = vadd.f32 %v3152_v58, %v1153_v45  ;;  %v1287_v9 = vadd.f32 %v1265_v3, %v1177_v62 }
 0x173   : > { %v1309_v11 = vmul.f32 0.7978846, %v1287_v9  ;;  %2455 = vmatmul.msk.f32.gmra.mxu2 %vm732_vm3, %v2989_v56  ;;  %v1222_v12 = vmul.f32 0.044715, %v1178_v7  ;;  %v918_v56 = vadd.f32 %v917_v4, %v825_v5  ;;  %v1200_v53 = vmul.f32 0.5, %v1178_v7 }
 0x175   : > { %2593 = vtanh.f32 %v1309_v11  ;;  %v1244_v13 = vmul.f32 %v1222_v12, %v1178_v7 }
 0x176   : > { %v1092_v50 = vpop.f32.mrf.mxu2 }
 0x177   : > { %v1154_v15 = vadd.f32 %v1092_v50, %v915_v10  ;;  %v920_v16 = vpop.f32.mrf.mxu1  ;;  %v1266_v17 = vmul.f32 %v1244_v13, %v1178_v7  ;;  %v1432_v50 = vpop.permute.xlu1 %1431 }
 0x178   : > { %v828_v18 = vpop.f32.mrf.mxu0 }
 0x179   : > { %v1179_v20 = vadd.f32 %v3152_v58, %v1154_v15  ;;  %v1288_v22 = vadd.f32 %v1266_v17, %v1178_v7  ;;  %v921_v55 = vadd.f32 %v920_v16, %v828_v18 }
 0x17b   : > { %v2594_v23 = vpop.eup %2593  ;;  %v1223_v24 = vmul.f32 0.044715, %v1179_v20  ;;  %2456 = vmatmul.msk.f32.gmra.mxu2 %vm732_vm3, %v993_v19  ;;  %v1310_v25 = vmul.f32 0.7978846, %v1288_v22  ;;  %v1201_v5 = vmul.f32 0.5, %v1179_v20 }
 0x17c   : > { %v1353_v27 = vadd.f32 1.0, %v2594_v23 }
 0x17d   : > { %v1245_v28 = vmul.f32 %v1223_v24, %v1179_v20  ;;  %2595 = vtanh.f32 %v1310_v25 }
 0x17e   : > { %v1375_v30 = vmul.f32 %v1353_v27, %v1199_v26  ;;  %v1095_v31 = vpop.f32.mrf.mxu2 }
 0x17f   : > { %v1267_v33 = vmul.f32 %v1245_v28, %v1179_v20  ;;  %v1155_v34 = vadd.f32 %v1095_v31, %v918_v56  ;;  %v923_v47 = vpop.f32.mrf.mxu1 }
 0x180   : > { %v1529_v35 = vmul.f32 %v1422_v32, %v1375_v30  ;;  %v831_v48 = vpop.f32.mrf.mxu0  ;;  %v1437_v32 = vpop.permute.xlu2 %1436 }
 0x181   : > { %v1289_v39 = vadd.f32 %v1267_v33, %v1179_v20  ;;  %v1180_v46 = vadd.f32 %v3152_v58, %v1155_v34  ;;  %v924_v10 = vadd.f32 %v923_v47, %v831_v48 }
 0x182   : > { %1552 = vst.msk [vmem:[#allocation3 + $0x21] sm:$0xff] %vm1551_vm4, %v1529_v35  ;;  %1685 = vrot.lane.b32.xlu2 %v1529_v35, %s2649_s10  ;;  %1596 = vrot.lane.b32.xlu0 %v1529_v35, %s2647_s29 }
 0x183   : > { %v2596_v21 = vpop.eup %2595  ;;  %v1311_v49 = vmul.f32 0.7978846, %v1289_v39  ;;  %v1224_v51 = vmul.f32 0.044715, %v1180_v46  ;;  %2457 = vmatmul.msk.f32.gmra.mxu2 %vm732_vm3, %v994_v37  ;;  %v1202_v24 = vmul.f32 0.5, %v1180_v46 }
 0x184   : > { %v1354_v54 = vadd.f32 1.0, %v2596_v21 }
 0x185   : > { %2597 = vtanh.f32 %v1311_v49  ;;  %v1246_v36 = vmul.f32 %v1224_v51, %v1180_v46 }
 0x186   : > { %v1098_v40 = vpop.f32.mrf.mxu2  ;;  %v1376_v59 = vmul.f32 %v1354_v54, %v1200_v53 }
 0x187   : > { %v1156_v60 = vadd.f32 %v1098_v40, %v921_v55  ;;  %v1268_v61 = vmul.f32 %v1246_v36, %v1180_v46  ;;  %v926_v3 = vpop.f32.mrf.mxu1  ;;  %v1407_v40 = vld [vmem:[%s3714_s5 + $0x50] sm:$0xff] }
 0x188   : > { %v1530_v62 = vmul.f32 %v1427_v57, %v1376_v59  ;;  %v834_v9 = vpop.f32.mrf.mxu0  ;;  %v1442_v57 = vpop.permute.xlu1 %1441 }
 0x189   : > { %v1181_v0 = vadd.f32 %v3152_v58, %v1156_v60  ;;  %v1290_v1 = vadd.f32 %v1268_v61, %v1180_v46  ;;  %v927_v26 = vadd.f32 %v926_v3, %v834_v9 }
 0x18a   : > { %1553 = vst.msk [vmem:[#allocation3 + $0x29] sm:$0xff] %vm1551_vm4, %v1530_v62  ;;  %1598 = vrot.lane.b32.xlu1 %v1530_v62, %s2647_s29  ;;  %1687 = vrot.lane.b32.xlu0 %v1530_v62, %s2649_s10 }
 0x18b   : > { %v2598_v2 = vpop.eup %2597  ;;  %v1225_v45 = vmul.f32 0.044715, %v1181_v0  ;;  %2458 = vmatmul.msk.f32.gmra.mxu2 %vm732_vm3, %v995_v63  ;;  %v1312_v4 = vmul.f32 0.7978846, %v1290_v1  ;;  %v1203_v21 = vmul.f32 0.5, %v1181_v0 }
 0x18c   : > { %v1355_v7 = vadd.f32 1.0, %v2598_v2 }
 0x18d   : > { %2599 = vtanh.f32 %v1312_v4  ;;  %v1247_v11 = vmul.f32 %v1225_v45, %v1181_v0 }
 0x18e   : > { %v1377_v12 = vmul.f32 %v1355_v7, %v1201_v5  ;;  %v1101_v13 = vpop.f32.mrf.mxu2 }
 0x18f   : > { %v1157_v15 = vadd.f32 %v1101_v13, %v924_v10  ;;  %v1269_v16 = vmul.f32 %v1247_v11, %v1181_v0  ;;  %v929_v27 = vpop.f32.mrf.mxu1  ;;  %v1447_v11 = vpop.permute.xlu2 %1446  ;;  %v1408_v13 = vld [vmem:[%s3714_s5 + $0x58] sm:$0xff] }
 0x190   : > { %v1531_v17 = vmul.f32 %v1432_v50, %v1377_v12  ;;  %v837_v28 = vpop.f32.mrf.mxu0 }
 0x191   : > { %v1182_v18 = vadd.f32 %v3152_v58, %v1157_v15  ;;  %v1291_v19 = vadd.f32 %v1269_v16, %v1181_v0  ;;  %v930_v51 = vadd.f32 %v929_v27, %v837_v28  ;;  %v1452_v27 = vpop.permute.xlu0 %1451 }
 0x192   : > { %1554 = vst.msk [vmem:[#allocation3 + $0x31] sm:$0xff] %vm1551_vm4, %v1531_v17  ;;  %1600 = vrot.lane.b32.xlu2 %v1531_v17, %s2647_s29 }
 0x193   : > { %v2600_v22 = vpop.eup %2599  ;;  %v1226_v20 = vmul.f32 0.044715, %v1182_v18  ;;  %v1313_v23 = vmul.f32 0.7978846, %v1291_v19  ;;  %v1204_v3 = vmul.f32 0.5, %v1182_v18 }
 0x194   : > { %v1356_v25 = vadd.f32 1.0, %v2600_v22 }
 0x195   : > { %2601 = vtanh.f32 %v1313_v23  ;;  %v1248_v56 = vmul.f32 %v1226_v20, %v1182_v18 }
 0x196   : > { %v1104_v30 = vpop.f32.mrf.mxu2  ;;  %v1378_v31 = vmul.f32 %v1356_v25, %v1202_v24 }
 0x197   : > { %v1158_v33 = vadd.f32 %v1104_v30, %v927_v26  ;;  %v1270_v34 = vmul.f32 %v1248_v56, %v1182_v18  ;;  %v932_v61 = vpop.f32.mrf.mxu1 }
 0x198   : > { %v1532_v35 = vmul.f32 %v1437_v32, %v1378_v31  ;;  %v840_v60 = vpop.f32.mrf.mxu0  ;;  %v1409_v32 = vld [vmem:[%s3714_s5 + $0x60] sm:$0xff] }
 0x199   : > { %v1183_v37 = vadd.f32 %v3152_v58, %v1158_v33  ;;  %v1292_v39 = vadd.f32 %v1270_v34, %v1182_v18  ;;  %v933_v5 = vadd.f32 %v932_v61, %v840_v60  ;;  %v1806_v60 = vld [vmem:[%s3712_s3 + $0x50] sm:$0xff]  ;;  %v1805_v61 = vld [vmem:[%s3712_s3 + $0x48] sm:$0xff] }
 0x19a   : > { %1689 = vrot.lane.b32.xlu2 %v1531_v17, %s2649_s10  ;;  %1602 = vrot.lane.b32.xlu0 %v1532_v35, %s2647_s29  ;;  %1555 = vst.msk [vmem:[#allocation3 + $0x39] sm:$0xff] %vm1551_vm4, %v1532_v35 }
 0x19b   : > { %v2602_v46 = vpop.eup %2601  ;;  %v1314_v47 = vmul.f32 0.7978846, %v1292_v39  ;;  %v1227_v48 = vmul.f32 0.044715, %v1183_v37  ;;  %v1205_v24 = vmul.f32 0.5, %v1183_v37 }
 0x19c   : > { %v1357_v49 = vadd.f32 1.0, %v2602_v46 }
 0x19d   : > { %2603 = vtanh.f32 %v1314_v47  ;;  %v1249_v53 = vmul.f32 %v1227_v48, %v1183_v37 }
 0x19e   : > { %v1107_v54 = vpop.f32.mrf.mxu2  ;;  %v1379_v55 = vmul.f32 %v1357_v49, %v1203_v21 }
 0x19f   : > { %v1159_v36 = vadd.f32 %v1107_v54, %v930_v51  ;;  %v1271_v59 = vmul.f32 %v1249_v53, %v1183_v37  ;;  %v935_v22 = vpop.f32.mrf.mxu1  ;;  %v1457_v53 = vpop.permute.xlu1 %1456  ;;  %v1410_v54 = vld [vmem:[%s3714_s5 + $0x68] sm:$0xff] }
 0x1a0   : > { %v1533_v62 = vmul.f32 %v1442_v57, %v1379_v55  ;;  %v843_v19 = vpop.f32.mrf.mxu0  ;;  %v1807_v57 = vld [vmem:[%s3712_s3 + $0x58] sm:$0xff] }
 0x1a1   : > { %v1184_v63 = vadd.f32 %v3152_v58, %v1159_v36  ;;  %v1293_v1 = vadd.f32 %v1271_v59, %v1183_v37  ;;  %v936_v26 = vadd.f32 %v935_v22, %v843_v19  ;;  %1986 = vmatpush.msrb.mxu0 %v1807_v57  ;;  %2563 = vmatpush.msra.mxu2 %v1807_v57  ;;  %v1412_v22 = vld [vmem:[%s3714_s5 + $0x78] sm:$0xff] }
 0x1a2   : > { %1604 = vrot.lane.b32.xlu1 %v1533_v62, %s2647_s29  ;;  %1556 = vst.msk [vmem:[#allocation3 + $0x41] sm:$0xff] %vm1551_vm4, %v1533_v62  ;;  %1471 = vperm.xlu2 %2588, %v1407_v40   ;;  %v2466_v57 = vld [vmem:[%s3712_s3 + $0x98] sm:$0xff] }
 0x1a3   : > { %v2604_v0 = vpop.eup %2603  ;;  %v1228_v2 = vmul.f32 0.044715, %v1184_v63  ;;  %1691 = vrot.lane.b32.xlu0 %v1532_v35, %s2649_s10  ;;  %v1315_v45 = vmul.f32 0.7978846, %v1293_v1  ;;  %v1206_v48 = vmul.f32 0.5, %v1184_v63  ;;  %1987 = vmatpush.msrb.mxu0 %v1806_v60 }
 0x1a4   : > { %v1358_v4 = vadd.f32 1.0, %v2604_v0  ;;  %2564 = vmatpush.msra.mxu2 %v1806_v60  ;;  %v2464_v60 = vld [vmem:[%s3712_s3 + $0x88] sm:$0xff] }
 0x1a5   : > { %2605 = vtanh.f32 %v1315_v45  ;;  %v1250_v7 = vmul.f32 %v1228_v2, %v1184_v63  ;;  %v1804_v2 = vld [vmem:[%s3712_s3 + $0x40] sm:$0xff]  ;;  %1988 = vmatpush.msrb.mxu0 %v1805_v61 }
 0x1a6   : > { %v1110_v9 = vpop.f32.mrf.mxu2  ;;  %v1380_v10 = vmul.f32 %v1358_v4, %v1204_v3  ;;  %2565 = vmatpush.msra.mxu2 %v1805_v61  ;;  %v1462_v3 = vpop.permute.xlu2 %1461  ;;  %v1411_v4 = vld [vmem:[%s3714_s5 + $0x70] sm:$0xff] }
 0x1a7   : > { %v1160_v12 = vadd.f32 %v1110_v9, %v933_v5  ;;  %v1272_v50 = vmul.f32 %v1250_v7, %v1184_v63  ;;  %1989 = vmatpush.msrb.mxu0 %v1804_v2  ;;  %v1803_v5 = vld [vmem:[%s3712_s3 + $0x38] sm:$0xff]  ;;  %v3226_v9 = vpop.f32.mrf.mxu3  ;;  %v1467_v19 = vpop.permute.xlu1 %1466  ;;  %v2525_v61 = vld [vmem:[%s3712_s3 + $0x110] sm:$0xff] }
 0x1a8   : > { %v1534_v15 = vmul.f32 %v1447_v11, %v1380_v10  ;;  %2566 = vmatpush.msra.mxu2 %v1804_v2  ;;  %v1802_v10 = vld [vmem:[%s3712_s3 + $0x30] sm:$0xff]  ;;  %v1801_v11 = vld [vmem:[%s3712_s3 + $0x28] sm:$0xff] }
 0x1a9   : > { %v1185_v16 = vadd.f32 %v3152_v58, %v1160_v12  ;;  %v1294_v17 = vadd.f32 %v1272_v50, %v1184_v63  ;;  %1990 = vmatpush.msrb.mxu0 %v1803_v5  ;;  %v1415_v2 = vld [vmem:[%s3714_s5 + $0x90] sm:$0xff] }
 0x1aa   : > { %1693 = vrot.lane.b32.xlu1 %v1533_v62, %s2649_s10  ;;  %1476 = vperm.xlu2 %2588, %v1408_v13   ;;  %1557 = vst.msk [vmem:[#allocation3 + $0x49] sm:$0xff] %vm1551_vm4, %v1534_v15 }
 0x1ab   : > { %v2606_v18 = vpop.eup %2605  ;;  %v1229_v20 = vmul.f32 0.044715, %v1185_v16  ;;  %1606 = vrot.lane.b32.xlu0 %v1534_v15, %s2647_s29  ;;  %v1316_v23 = vmul.f32 0.7978846, %v1294_v17  ;;  %v1207_v1 = vmul.f32 0.5, %v1185_v16  ;;  %1991 = vmatpush.msrb.mxu0 %v1802_v10 }
 0x1ac   : > { %v1359_v25 = vadd.f32 1.0, %v2606_v18  ;;  %2567 = vmatpush.msra.mxu2 %v1803_v5  ;;  %v1799_v18 = vld [vmem:[%s3712_s3 + $0x18] sm:$0xff] }
 0x1ad   : > { %2607 = vtanh.f32 %v1316_v23  ;;  %v1251_v56 = vmul.f32 %v1229_v20, %v1185_v16  ;;  %1992 = vmatpush.msrb.mxu0 %v1801_v11  ;;  %v2650_v23 = vmov 0.0  }
 0x1ae   : > { %v1113_v28 = vpop.f32.mrf.mxu2  ;;  %v1381_v30 = vmul.f32 %v1359_v25, %v1205_v24  ;;  %2568 = vmatpush.msra.mxu2 %v1802_v10  ;;  %684 = vst.msk [vmem:[#allocation3 + $0x8] sm:$0xff] %vm682_vm5, %v2650_v23  ;;  %v1798_v24 = vld [vmem:[%s3712_s3 + $0x10] sm:$0xff]  ;;  %v2470_v25 = vld [vmem:[%s3712_s3 + $0xb8] sm:$0xff] }
 0x1af   : > { %v1161_v31 = vadd.f32 %v1113_v28, %v936_v26  ;;  %v1273_v33 = vmul.f32 %v1251_v56, %v1185_v16  ;;  %685 = vst.msk [vmem:[#allocation3 + $0x10] sm:$0xff] %vm682_vm5, %v2650_v23  ;;  %v1797_v26 = vld [vmem:[%s3712_s3 + $0x8] sm:$0xff]  ;;  %v846_v56 = vpop.f32.mrf.mxu0  ;;  %v938_v28 = vpop.f32.mrf.mxu1  ;;  %1894 = vmatpush.msrb.mxu3 %v2470_v25 }
 0x1b0   : > { %v1535_v34 = vmul.f32 %v1452_v27, %v1381_v30  ;;  %2569 = vmatpush.msra.mxu2 %v1801_v11  ;;  %v944_v27 = vpop.f32.mrf.mxu3  ;;  %686 = vst.msk [vmem:[#allocation3 + $0x18] sm:$0xff] %vm682_vm5, %v2650_v23 }
 0x1b1   : > { %v1186_v35 = vadd.f32 %v3152_v58, %v1161_v31  ;;  %v1295_v39 = vadd.f32 %v1273_v33, %v1185_v16  ;;  %v1800_v16 = vld [vmem:[%s3712_s3 + $0x20] sm:$0xff]  ;;  %689 = vst.msk [vmem:[#allocation3 + $0xcf] sm:$0xff] %vm682_vm5, %v2650_v23 }
 0x1b2   : > { %1558 = vst.msk [vmem:[#allocation3 + $0x51] sm:$0xff] %vm1551_vm4, %v1535_v34  ;;  %1695 = vrot.lane.b32.xlu1 %v1534_v15, %s2649_s10  ;;  %1481 = vperm.xlu2 %2588, %v1409_v32   ;;  %v1796_v31 = vld [vmem:[%s3712_s3] sm:$0xff]  ;;  %v939_v32 = vadd.f32 %v938_v28, %v846_v56 }
 0x1b3   : > { %v2608_v37 = vpop.eup %2607  ;;  %v1230_v46 = vmul.f32 0.044715, %v1186_v35  ;;  %1608 = vrot.lane.b32.xlu0 %v1535_v34, %s2647_s29  ;;  %v1317_v47 = vmul.f32 0.7978846, %v1295_v39  ;;  %v1208_v50 = vmul.f32 0.5, %v1186_v35  ;;  %1993 = vmatpush.msrb.mxu0 %v1800_v16  ;;  %690 = vst.msk [vmem:[#allocation3 + $0xd7] sm:$0xff] %vm682_vm5, %v2650_v23 }
 0x1b4   : > { %v1360_v21 = vadd.f32 1.0, %v2608_v37  ;;  %2570 = vmatpush.msra.mxu2 %v1800_v16  ;;  %691 = vst.msk [vmem:[#allocation3 + $0xdf] sm:$0xff] %vm682_vm5, %v2650_v23  ;;  %v1413_v33 = vld [vmem:[%s3714_s5 + $0x80] sm:$0xff]  ;;  %v2469_v39 = vld [vmem:[%s3712_s3 + $0xb0] sm:$0xff]  ;;  %v2468_v37 = vld [vmem:[%s3712_s3 + $0xa8] sm:$0xff] }
 0x1b5   : > { %2609 = vtanh.f32 %v1317_v47  ;;  %v1252_v49 = vmul.f32 %v1230_v46, %v1186_v35  ;;  %1994 = vmatpush.msrb.mxu0 %v1799_v18  ;;  %v2526_v46 = vld [vmem:[%s3712_s3 + $0x118] sm:$0xff]  ;;  %1895 = vmatpush.msrb.mxu3 %v2469_v39  ;;  %688 = vst.msk [vmem:[#allocation3 + $0x20] sm:$0x1] %vm687_vm6, %v2650_v23  ;;  %v2459_v16 = vld [vmem:[%s3712_s3 + $0x60] sm:$0xff] }
 0x1b6   : > { %v1382_v51 = vmul.f32 %v1360_v21, %v1206_v48  ;;  %v3206_v40 = vpop.f32.mrf.mxu2  ;;  %2571 = vmatpush.msra.mxu2 %v1799_v18  ;;  %2170 = vmatpush.msrb.mxu1 %v2526_v46  ;;  %693 = vst.msk [vmem:[#allocation3 + $0xe7] sm:$0x3] %vm692_vm9, %v2650_v23  ;;  %v529_v23 = vld [vmem:[%s2702_s27 + $0xe9] sm:$0x7f] }
 0x1b7   : > { %v1274_v55 = vmul.f32 %v1252_v49, %v1186_v35  ;;  %1995 = vmatpush.msrb.mxu0 %v1798_v24  ;;  %v849_v47 = vpop.f32.mrf.mxu0  ;;  %1896 = vmatpush.msrb.mxu3 %v2468_v37  ;;  %v2467_v49 = vld [vmem:[%s3712_s3 + $0xa0] sm:$0xff] }
 0x1b8   : > { %v1536_v36 = vmul.f32 %v1457_v53, %v1382_v51  ;;  %2572 = vmatpush.msra.mxu2 %v1798_v24  ;;  %v947_v48 = vpop.f32.mrf.mxu3  ;;  %v942_v51 = vadd.f32 %v3226_v9, %v849_v47  ;;  %v1775_v53 = vld [vmem:[#allocation3 + $0x10] sm:$0xff]  ;;  %2171 = vmatpush.msrb.mxu1 %v2525_v61  ;;  %v2524_v9 = vld [vmem:[%s3712_s3 + $0x108] sm:$0xff] }
 0x1b9   : > { %v1296_v59 = vadd.f32 %v1274_v55, %v1186_v35  ;;  %1996 = vmatpush.msrb.mxu0 %v1797_v26  ;;  %v1162_v35 = vadd.f32 %v3206_v40, %v939_v32  ;;  %v1414_v55 = vld [vmem:[%s3714_s5 + $0x88] sm:$0xff]  ;;  %1897 = vmatpush.msrb.mxu3 %v2467_v49  ;;  %v2519_v61 = vld [vmem:[%s3712_s3 + $0xe0] sm:$0xff] }
 0x1ba   : > { %1697 = vrot.lane.b32.xlu1 %v1535_v34, %s2649_s10  ;;  %1486 = vperm.xlu2 %2588, %v1410_v54   ;;  %1559 = vst.msk [vmem:[#allocation3 + $0x59] sm:$0xff] %vm1551_vm4, %v1536_v36  ;;  %v1774_v34 = vld [vmem:[#allocation3 + $0x8] sm:$0xff] }
 0x1bb   : > { %v2610_v62 = vpop.eup %2609  ;;  %1610 = vrot.lane.b32.xlu0 %v1536_v36, %s2647_s29  ;;  %v1318_v63 = vmul.f32 0.7978846, %v1296_v59  ;;  %1997 = vmatpush.msrb.mxu0 %v1796_v31  ;;  %v3291_v21 = vadd.f32 %v3152_v58, %v1162_v35 }
 0x1bc   : > { %v1361_v0 = vadd.f32 1.0, %v2610_v62  ;;  %2493 = vmatmul.msk.f32.vlgmr.msrb.gmra.mxu0 %vm682_vm5, %v1774_v34  ;;  %2573 = vmatpush.msra.mxu2 %v1797_v26 }
 0x1bd   : > { %2611 = vtanh.f32 %v1318_v63  ;;  %1898 = vmatpush.msrb.mxu3 %v2466_v57  ;;  %v1231_v40 = vmul.f32 0.044715, %v3291_v21  ;;  %2172 = vmatpush.msrb.mxu1 %v2524_v9 }
 0x1be   : > { %v1383_v45 = vmul.f32 %v1361_v0, %v1207_v1  ;;  %v3236_v13 = vpop.f32.mrf.mxu2  ;;  %2574 = vmatpush.msra.mxu2 %v1796_v31  ;;  %v2463_v1 = vld [vmem:[%s3712_s3 + $0x80] sm:$0xff] }
 0x1bf   : > { %v1163_v59 = vadd.f32 %v3236_v13, %v942_v51  ;;  %v1253_v62 = vmul.f32 %v1231_v40, %v3291_v21  ;;  %v1417_v31 = vld [vmem:[%s3714_s5 + $0xa0] sm:$0xff]  ;;  %v2520_v40 = vld [vmem:[%s3712_s3 + $0xe8] sm:$0xff] }
 0x1c0   : > { %v1537_v7 = vmul.f32 %v1462_v3, %v1383_v45  ;;  %v950_v0 = vpop.f32.mrf.mxu3  ;;  %v945_v45 = vadd.f32 %v944_v27, %v3081_v38  ;;  %v2462_v3 = vld [vmem:[%s3712_s3 + $0x78] sm:$0xff]  ;;  %v2460_v38 = vld [vmem:[%s3712_s3 + $0x68] sm:$0xff] }
 0x1c1   : > { %v3318_v63 = vadd.f32 %v3152_v58, %v1163_v59  ;;  %v1275_v5 = vmul.f32 %v1253_v62, %v3291_v21  ;;  %v951_v32 = vadd.f32 %v950_v0, %v3098_v42 }
 0x1c2   : > { %1699 = vrot.lane.b32.xlu1 %v1536_v36, %s2649_s10  ;;  %1491 = vperm.xlu2 %2588, %v1411_v4   ;;  %1560 = vst.msk [vmem:[#allocation3 + $0x61] sm:$0xff] %vm1551_vm4, %v1537_v7  ;;  %v2465_v36 = vld [vmem:[%s3712_s3 + $0x90] sm:$0xff] }
 0x1c3   : > { %v2612_v12 = vpop.eup %2611  ;;  %1612 = vrot.lane.b32.xlu0 %v1537_v7, %s2647_s29  ;;  %1899 = vmatpush.msrb.mxu3 %v2465_v36  ;;  %v1232_v11 = vmul.f32 0.044715, %v3318_v63  ;;  %v1297_v13 = vadd.f32 %v1275_v5, %v3291_v21  ;;  %v2521_v36 = vld [vmem:[%s3712_s3 + $0xf0] sm:$0xff] }
 0x1c4   : > { %v1362_v15 = vadd.f32 1.0, %v2612_v12  ;;  %2494 = vmatmul.msk.f32.gmra.mxu0 %vm682_vm5, %v1775_v53 }
 0x1c5   : > { %1900 = vmatpush.msrb.mxu3 %v2464_v60  ;;  %v1319_v18 = vmul.f32 0.7978846, %v1297_v13  ;;  %v1209_v60 = vmul.f32 0.5, %v3291_v21 }
 0x1c6   : > { %v1384_v17 = vmul.f32 %v1362_v15, %v1208_v50  ;;  %v1122_v30 = vpop.f32.mrf.mxu2  ;;  %v1254_v15 = vmul.f32 %v1232_v11, %v3318_v63 }
 0x1c7   : > { %1901 = vmatpush.msrb.mxu3 %v2463_v1  ;;  %v1164_v10 = vadd.f32 %v1122_v30, %v945_v45  ;;  %2613 = vtanh.f32 %v1319_v18 }
 0x1c8   : > { %v1538_v20 = vmul.f32 %v1467_v19, %v1384_v17  ;;  %v1416_v17 = vld [vmem:[%s3714_s5 + $0x98] sm:$0xff]  ;;  %v948_v19 = vadd.f32 %v947_v48, %v3091_v41  ;;  %v1276_v25 = vmul.f32 %v1254_v15, %v3318_v63 }
 0x1c9   : > { %1902 = vmatpush.msrb.mxu3 %v2462_v3  ;;  %v3343_v50 = vadd.f32 %v3152_v58, %v1164_v10  ;;  %v2518_v15 = vld [vmem:[%s3712_s3 + $0xd8] sm:$0xff] }
 0x1ca   : > { %1701 = vrot.lane.b32.xlu1 %v1537_v7, %s2649_s10  ;;  %1496 = vperm.xlu2 %2588, %v1412_v22   ;;  %1561 = vst.msk [vmem:[#allocation3 + $0x69] sm:$0xff] %vm1551_vm4, %v1538_v20  ;;  %v2461_v7 = vld [vmem:[%s3712_s3 + $0x70] sm:$0xff]  ;;  %v953_v22 = vpop.f32.mrf.mxu3  ;;  %v1298_v28 = vadd.f32 %v1276_v25, %v3318_v63 }
 0x1cb   : > { %1614 = vrot.lane.b32.xlu0 %v1538_v20, %s2647_s29  ;;  %1903 = vmatpush.msrb.mxu3 %v2461_v7  ;;  %v1233_v26 = vmul.f32 0.044715, %v3343_v50  ;;  %v954_v59 = vadd.f32 %v953_v22, %v3106_v43  ;;  %v2516_v22 = vld [vmem:[%s3712_s3 + $0xc8] sm:$0xff] }
 0x1cc   : > { %v1320_v35 = vmul.f32 0.7978846, %v1298_v28 }
 0x1cd   : > { %1904 = vmatpush.msrb.mxu3 %v2460_v38  ;;  %v1255_v30 = vmul.f32 %v1233_v26, %v3343_v50  ;;  %v2614_v47 = vpop.eup %2613 }
 0x1ce   : > { %v1125_v54 = vpop.f32.mrf.mxu2  ;;  %2615 = vtanh.f32 %v1320_v35  ;;  %v1363_v57 = vadd.f32 1.0, %v2614_v47 }
 0x1cf   : > { %1905 = vmatpush.msrb.mxu3 %v2459_v16  ;;  %v1165_v24 = vadd.f32 %v1125_v54, %v948_v19  ;;  %v1277_v39 = vmul.f32 %v1255_v30, %v3343_v50  ;;  %v2517_v16 = vld [vmem:[%s3712_s3 + $0xd0] sm:$0xff]  ;;  %v1210_v19 = vmul.f32 0.5, %v3318_v63 }
 0x1d0   : > { %v1385_v45 = vmul.f32 %v1363_v57, %v1209_v60 }
 0x1d1   : > { %v3360_v41 = vadd.f32 %v3152_v58, %v1165_v24  ;;  %v1299_v53 = vadd.f32 %v1277_v39, %v3343_v50 }
 0x1d2   : > { %1703 = vrot.lane.b32.xlu1 %v1538_v20, %s2649_s10  ;;  %1501 = vperm.xlu2 %2588, %v1413_v33   ;;  %v2523_v20 = vld [vmem:[%s3712_s3 + $0x100] sm:$0xff]  ;;  %v2522_v33 = vld [vmem:[%s3712_s3 + $0xf8] sm:$0xff]  ;;  %v956_v46 = vpop.f32.mrf.mxu3 }
 0x1d3   : > { %2173 = vmatpush.msrb.mxu1 %v2523_v20  ;;  %v1234_v37 = vmul.f32 0.044715, %v3360_v41  ;;  %v1321_v1 = vmul.f32 0.7978846, %v1299_v53 }
 0x1d4   : > { %v2616_v3 = vpop.eup %2615 }
 0x1d5   : > { %2174 = vmatpush.msrb.mxu1 %v2522_v33  ;;  %v1256_v54 = vmul.f32 %v1234_v37, %v3360_v41  ;;  %2617 = vtanh.f32 %v1321_v1  ;;  %v1364_v13 = vadd.f32 1.0, %v2616_v3  ;;  %v1211_v37 = vmul.f32 0.5, %v3343_v50 }
 0x1d6   : > { %v1128_v4 = vpop.f32.mrf.mxu2  ;;  %v1212_v1 = vmul.f32 0.5, %v3360_v41 }
 0x1d7   : > { %v1166_v34 = vadd.f32 %v1128_v4, %v951_v32  ;;  %2175 = vmatpush.msrb.mxu1 %v2521_v36  ;;  %v1278_v0 = vmul.f32 %v1256_v54, %v3360_v41  ;;  %v1386_v26 = vmul.f32 %v1364_v13, %v1210_v19 }
 0x1d9   : > { %v3375_v42 = vadd.f32 %v3152_v58, %v1166_v34  ;;  %2176 = vmatpush.msrb.mxu1 %v2520_v40  ;;  %v1300_v38 = vadd.f32 %v1278_v0, %v3360_v41 }
 0x1da   : > { %1506 = vperm.xlu2 %2588, %v1414_v55   ;;  %v1418_v55 = vld [vmem:[%s3714_s5 + $0xa8] sm:$0xff]  ;;  %v959_v43 = vpop.f32.mrf.mxu3 }
 0x1db   : > { %2177 = vmatpush.msrb.mxu1 %v2519_v61  ;;  %v1322_v20 = vmul.f32 0.7978846, %v1300_v38  ;;  %v960_v35 = vadd.f32 %v959_v43, %v3119_v6 }
 0x1dc   : > { %v1686_v12 = vpop.permute.xlu2 %1685 }
 0x1dd   : > { %2178 = vmatpush.msrb.mxu1 %v2518_v15  ;;  %2619 = vtanh.f32 %v1322_v20 }
 0x1de   : > { %v1131_v27 = vpop.f32.mrf.mxu2 }
 0x1df   : > { %v1167_v62 = vadd.f32 %v1131_v27, %v954_v59  ;;  %2179 = vmatpush.msrb.mxu1 %v2517_v16  ;;  %v2618_v27 = vpop.eup %2617 }
 0x1e0   : > { %v1365_v34 = vadd.f32 1.0, %v2618_v27 }
 0x1e1   : > { %v3398_v10 = vadd.f32 %v3152_v58, %v1167_v62  ;;  %2180 = vmatpush.msrb.mxu1 %v2516_v22 }
 0x1e2   : > { %1511 = vperm.xlu2 %2588, %v1415_v2   ;;  %v1235_v2 = vmul.f32 0.044715, %v3375_v42  ;;  %v962_v32 = vpop.f32.mrf.mxu3 }
 0x1e3   : > { %v1236_v25 = vmul.f32 0.044715, %v3398_v10  ;;  %v2620_v53 = vpop.eup %2619  ;;  %v963_v40 = vadd.f32 %v962_v32, %v3126_v8  ;;  %v1214_v32 = vmul.f32 0.5, %v3398_v10 }
 0x1e4   : > { %v1257_v11 = vmul.f32 %v1235_v2, %v3375_v42  ;;  %v1366_v60 = vadd.f32 1.0, %v2620_v53 }
 0x1e6   : > { %v1134_v51 = vpop.f32.mrf.mxu2  ;;  %v1279_v24 = vmul.f32 %v1257_v11, %v3375_v42  ;;  %v1388_v3 = vmul.f32 %v1366_v60, %v1212_v1 }
 0x1e8   : > { %v1301_v30 = vadd.f32 %v1279_v24, %v3375_v42 }
 0x1ea   : > { %1516 = vperm.xlu2 %2588, %v1416_v17   ;;  %v957_v17 = vadd.f32 %v956_v46, %v3113_v44  ;;  %v2515_v44 = vld [vmem:[%s3712_s3 + $0xc0] sm:$0xff]  ;;  %v1323_v47 = vmul.f32 0.7978846, %v1301_v30  ;;  %v965_v61 = vpop.f32.mrf.mxu3 }
 0x1eb   : > { %2181 = vmatpush.msrb.mxu1 %v2515_v44 }
 0x1ec   : > { %v1601_v56 = vpop.permute.xlu2 %1600  ;;  %v1168_v18 = vadd.f32 %v1134_v51, %v957_v17  ;;  %v1387_v51 = vmul.f32 %v1365_v34, %v1211_v37  ;;  %2621 = vtanh.f32 %v1323_v47 }
 0x1ed   : > { %1665 = vst.msk [vmem:[#allocation3 + $0x30] sm:$0xff] %vm1662_vm7, %v1601_v56 }
 0x1ee   : > { %v3425_v28 = vadd.f32 %v3152_v58, %v1168_v18 }
 0x1f2   : > { %1521 = vperm.xlu2 %2588, %v1417_v31   ;;  %v1258_v31 = vmul.f32 %v1236_v25, %v3398_v10  ;;  %v968_v19 = vpop.f32.mrf.mxu3 }
 0x1f4   : > { %v1690_v48 = vpop.permute.xlu2 %1689  ;;  %v1597_v49 = vpop.permute.xlu0 %1596 }
 0x1f5   : > { %1663 = vst.msk [vmem:[#allocation3 + $0x20] sm:$0xff] %vm1662_vm7, %v1597_v49  ;;  %v1237_v49 = vmul.f32 0.044715, %v3425_v28 }
 0x1f6   : > { %1752 = vst.msk [vmem:[#allocation3 + $0x1f] sm:$0xff] %vm1751_vm8, %v1686_v12  ;;  %v1137_v12 = vpop.f32.mrf.mxu2 }
 0x1f7   : > { %v1169_v46 = vadd.f32 %v1137_v12, %v960_v35  ;;  %v1259_v50 = vmul.f32 %v1237_v49, %v3425_v28  ;;  %v1213_v12 = vmul.f32 0.5, %v3375_v42  ;;  %v2637_v42 = vld [vmem:[%s3711_s2] ss:$0 sm:$0xff] }
 0x1f9   : > { %v3440_v6 = vadd.f32 %v3152_v58, %v1169_v46  ;;  %v1281_v2 = vmul.f32 %v1259_v50, %v3425_v28 }
 0x1fa   : > { %1526 = vperm.xlu2 %2588, %v1418_v55  }
 0x1fb   : > { %v1238_v8 = vmul.f32 0.044715, %v3440_v6  ;;  %v1303_v41 = vadd.f32 %v1281_v2, %v3425_v28 }
 0x1fc   : > { %v1599_v4 = vpop.permute.xlu1 %1598  ;;  %v1472_v5 = vpop.permute.xlu2 %1471 }
 0x1fd   : > { %1664 = vst.msk [vmem:[#allocation3 + $0x28] sm:$0xff] %vm1662_vm7, %v1599_v4  ;;  %v1539_v21 = vmul.f32 %v1472_v5, %v1385_v45  ;;  %v1688_v7 = vpop.permute.xlu0 %1687  ;;  %v1776_v9 = vld [vmem:[#allocation3 + $0x18] sm:$0xff]  ;;  %v2622_v4 = vpop.eup %2621  ;;  %v1260_v38 = vmul.f32 %v1238_v8, %v3440_v6  ;;  %v1325_v16 = vmul.f32 0.7978846, %v1303_v41 }
 0x1fe   : > { %1754 = vst.msk [vmem:[#allocation3 + $0x2f] sm:$0xff] %vm1751_vm8, %v1690_v48  ;;  %2495 = vmatmul.msk.f32.gmra.mxu0 %vm682_vm5, %v1776_v9  ;;  %v1140_v39 = vpop.f32.mrf.mxu2  ;;  %v1280_v48 = vmul.f32 %v1258_v31, %v3398_v10  ;;  %v1367_v11 = vadd.f32 1.0, %v2622_v4  ;;  %v969_v31 = vadd.f32 %v968_v19, %v3139_v52 }
 0x1ff   : > { %1562 = vst.msk [vmem:[#allocation3 + $0x71] sm:$0xff] %vm1551_vm4, %v1539_v21  ;;  %1705 = vrot.lane.b32.xlu1 %v1539_v21, %s2649_s10  ;;  %1616 = vrot.lane.b32.xlu0 %v1539_v21, %s2647_s29  ;;  %v1170_v62 = vadd.f32 %v1140_v39, %v963_v40  ;;  %v1282_v17 = vmul.f32 %v1260_v38, %v3440_v6  ;;  %v1215_v40 = vmul.f32 0.5, %v3425_v28 }
 0x200   : > { %1753 = vst.msk [vmem:[#allocation3 + $0x27] sm:$0xff] %vm1751_vm8, %v1688_v7  ;;  %v1302_v36 = vadd.f32 %v1280_v48, %v3398_v10  ;;  %v1389_v22 = vmul.f32 %v1367_v11, %v1213_v12 }
 0x201   : > { %v3454_v21 = vadd.f32 %v3152_v58, %v1170_v62  ;;  %v966_v58 = vadd.f32 %v965_v61, %v3134_v14 }
 0x202   : > { %v1324_v0 = vmul.f32 0.7978846, %v1302_v36 }
 0x203   : > { %v1239_v13 = vmul.f32 0.044715, %v3454_v21 }
 0x204   : > { %v1477_v56 = vpop.permute.xlu2 %1476  ;;  %2623 = vtanh.f32 %v1324_v0 }
 0x205   : > { %v1540_v63 = vmul.f32 %v1477_v56, %v1386_v26  ;;  %v1261_v14 = vmul.f32 %v1239_v13, %v3454_v21  ;;  %2625 = vtanh.f32 %v1325_v16 }
 0x206   : > { %v1143_v45 = vpop.f32.mrf.mxu2 }
 0x207   : > { %1563 = vst.msk [vmem:[#allocation3 + $0x79] sm:$0xff] %vm1551_vm4, %v1540_v63  ;;  %v1777_v33 = vld [vmem:[#allocation3 + $0x20] sm:$0xff]  ;;  %1707 = vrot.lane.b32.xlu1 %v1540_v63, %s2649_s10  ;;  %1618 = vrot.lane.b32.xlu0 %v1540_v63, %s2647_s29  ;;  %v1778_v59 = vld [vmem:[#allocation3 + $0x28] sm:$0xff]  ;;  %v1171_v15 = vadd.f32 %v1143_v45, %v966_v58  ;;  %v1304_v63 = vadd.f32 %v1282_v17, %v3440_v6 }
 0x208   : > { %2471 = vmatmul.msk.f32.vlgmr.msrb.gmra.mxu3 %vm682_vm5, %v1777_v33  ;;  %2496 = vmatmul.msk.f32.gmra.mxu0 %vm682_vm5, %v1777_v33  ;;  %v1283_v33 = vmul.f32 %v1261_v14, %v3454_v21 }
 0x209   : > { %v3472_v56 = vadd.f32 %v2637_v42, %v1171_v15  ;;  %v1326_v35 = vmul.f32 0.7978846, %v1304_v63 }
 0x20a   : > { %v2624_v18 = vpop.eup %2623  ;;  %v1305_v52 = vadd.f32 %v1283_v33, %v3454_v21 }
 0x20b   : > { %v1368_v30 = vadd.f32 1.0, %v2624_v18  ;;  %v1240_v39 = vmul.f32 0.044715, %v3472_v56  ;;  %v2626_v46 = vpop.eup %2625  ;;  %2627 = vtanh.f32 %v1326_v35  ;;  %v1217_v18 = vmul.f32 0.5, %v3454_v21 }
 0x20c   : > { %v1482_v54 = vpop.permute.xlu2 %1481  ;;  %v1603_v55 = vpop.permute.xlu0 %1602  ;;  %v1369_v36 = vadd.f32 1.0, %v2626_v46 }
 0x20d   : > { %v1541_v57 = vmul.f32 %v1482_v54, %v1387_v51  ;;  %1666 = vst.msk [vmem:[#allocation3 + $0x38] sm:$0xff] %vm1662_vm7, %v1603_v55  ;;  %v1390_v37 = vmul.f32 %v1368_v30, %v1214_v32  ;;  %v971_v51 = vpop.f32.mrf.mxu3  ;;  %v1262_v55 = vmul.f32 %v1240_v39, %v3472_v56 }
 0x20e   : > { %v1146_v25 = vpop.f32.mrf.mxu2  ;;  %v972_v50 = vadd.f32 %v971_v51, %v3143_v29  ;;  %v1391_v1 = vmul.f32 %v1369_v36, %v1215_v40 }
 0x20f   : > { %1564 = vst.msk [vmem:[#allocation3 + $0x81] sm:$0xff] %vm1551_vm4, %v1541_v57  ;;  %1709 = vrot.lane.b32.xlu1 %v1541_v57, %s2649_s10  ;;  %1620 = vrot.lane.b32.xlu0 %v1541_v57, %s2647_s29  ;;  %v1172_v34 = vadd.f32 %v1146_v25, %v969_v31  ;;  %v1284_v61 = vmul.f32 %v1262_v55, %v3472_v56  ;;  %v1218_v31 = vmul.f32 0.5, %v3472_v56 }
 0x210   : > { %2472 = vmatmul.msk.f32.gmra.mxu3 %vm682_vm5, %v1778_v59  ;;  %2497 = vmatmul.msk.f32.gmra.mxu0 %vm682_vm5, %v1778_v59  ;;  %v1327_v59 = vmul.f32 0.7978846, %v1305_v52 }
 0x211   : > { %v3488_v10 = vadd.f32 %v2637_v42, %v1172_v34  ;;  %v2628_v0 = vpop.eup %2627  ;;  %v1306_v28 = vadd.f32 %v1284_v61, %v3472_v56 }
 0x212   : > { %2629 = vtanh.f32 %v1327_v59 }
 0x213   : > { %v1241_v62 = vmul.f32 0.044715, %v3488_v10 }
 0x214   : > { %v1605_v5 = vpop.permute.xlu1 %1604  ;;  %v1487_v43 = vpop.permute.xlu2 %1486 }
 0x215   : > { %1667 = vst.msk [vmem:[#allocation3 + $0x40] sm:$0xff] %vm1662_vm7, %v1605_v5  ;;  %v1542_v7 = vmul.f32 %v1487_v43, %v1388_v3  ;;  %v1692_v9 = vpop.permute.xlu0 %1691  ;;  %v1263_v5 = vmul.f32 %v1241_v62, %v3488_v10  ;;  %v1370_v43 = vadd.f32 1.0, %v2628_v0 }
 0x216   : > { %1755 = vst.msk [vmem:[#allocation3 + $0x37] sm:$0xff] %vm1751_vm8, %v1692_v9  ;;  %v1149_v57 = vpop.f32.mrf.mxu2  ;;  %v1328_v9 = vmul.f32 0.7978846, %v1306_v28 }
 0x217   : > { %1565 = vst.msk [vmem:[#allocation3 + $0x89] sm:$0xff] %vm1551_vm4, %v1542_v7  ;;  %1711 = vrot.lane.b32.xlu1 %v1542_v7, %s2649_s10  ;;  %1622 = vrot.lane.b32.xlu0 %v1542_v7, %s2647_s29  ;;  %v1173_v60 = vadd.f32 %v1149_v57, %v972_v50  ;;  %v1216_v7 = vmul.f32 0.5, %v3440_v6  ;;  %v1285_v41 = vmul.f32 %v1263_v5, %v3488_v10 }
 0x218   : > { %v2630_v11 = vpop.eup %2629  ;;  %2631 = vtanh.f32 %v1328_v9 }
 0x219   : > { %v3503_v29 = vadd.f32 %v2637_v42, %v1173_v60  ;;  %v1392_v58 = vmul.f32 %v1370_v43, %v1216_v7  ;;  %v1307_v6 = vadd.f32 %v1285_v41, %v3488_v10 }
 0x21b   : > { %v1242_v38 = vmul.f32 0.044715, %v3503_v29 }
 0x21c   : > { %v1694_v20 = vpop.permute.xlu1 %1693  ;;  %v1492_v24 = vpop.permute.xlu2 %1491 }
 0x21d   : > { %1756 = vst.msk [vmem:[#allocation3 + $0x3f] sm:$0xff] %vm1751_vm8, %v1694_v20  ;;  %v1543_v26 = vmul.f32 %v1492_v24, %v1389_v22  ;;  %v1607_v44 = vpop.permute.xlu0 %1606  ;;  %v1779_v27 = vld [vmem:[#allocation3 + $0x30] sm:$0xff]  ;;  %v1264_v19 = vmul.f32 %v1242_v38, %v3503_v29  ;;  %v1371_v22 = vadd.f32 1.0, %v2630_v11  ;;  %v1329_v20 = vmul.f32 0.7978846, %v1307_v6 }
 0x21e   : > { %1668 = vst.msk [vmem:[#allocation3 + $0x48] sm:$0xff] %vm1662_vm7, %v1607_v44  ;;  %2473 = vmatmul.msk.f32.gmra.mxu3 %vm682_vm5, %v1779_v27  ;;  %2498 = vmatmul.msk.f32.gmra.mxu0 %vm682_vm5, %v1779_v27 }
 0x21f   : > { %1566 = vst.msk [vmem:[#allocation3 + $0x91] sm:$0xff] %vm1551_vm4, %v1543_v26  ;;  %1713 = vrot.lane.b32.xlu1 %v1543_v26, %s2649_s10  ;;  %1624 = vrot.lane.b32.xlu0 %v1543_v26, %s2647_s29  ;;  %v1286_v24 = vmul.f32 %v1264_v19, %v3503_v29  ;;  %v1393_v25 = vmul.f32 %v1371_v22, %v1217_v18  ;;  %v2632_v26 = vpop.eup %2631  ;;  %2633 = vtanh.f32 %v1329_v20 }
 0x220   : > { %v1372_v30 = vadd.f32 1.0, %v2632_v26 }
 0x221   : > { %v1308_v21 = vadd.f32 %v1286_v24, %v3503_v29 }
 0x222   : > { %v1394_v33 = vmul.f32 %v1372_v30, %v1218_v31 }
 0x223   : > { %v1330_v32 = vmul.f32 0.7978846, %v1308_v21 }
 0x224   : > { %v1696_v47 = vpop.permute.xlu1 %1695  ;;  %v1497_v48 = vpop.permute.xlu2 %1496  ;;  %v1780_v49 = vld [vmem:[#allocation3 + $0x38] sm:$0xff] }
 0x225   : > { %1757 = vst.msk [vmem:[#allocation3 + $0x47] sm:$0xff] %vm1751_vm8, %v1696_v47  ;;  %v1544_v53 = vmul.f32 %v1497_v48, %v1390_v37  ;;  %v1609_v54 = vpop.permute.xlu0 %1608  ;;  %2527 = vmatmul.msk.f32.vlgmr.msrb.gmra.mxu1 %vm682_vm5, %v1780_v49  ;;  %v2634_v34 = vpop.eup %2633  ;;  %2635 = vtanh.f32 %v1330_v32  ;;  %v1219_v47 = vmul.f32 0.5, %v3488_v10  ;;  %v1220_v10 = vmul.f32 0.5, %v3503_v29 }
 0x226   : > { %1669 = vst.msk [vmem:[#allocation3 + $0x50] sm:$0xff] %vm1662_vm7, %v1609_v54  ;;  %2474 = vmatmul.msk.f32.gmra.mxu3 %vm682_vm5, %v1780_v49  ;;  %2499 = vmatmul.msk.f32.gmra.mxu0 %vm682_vm5, %v1780_v49  ;;  %v1373_v56 = vadd.f32 1.0, %v2634_v34 }
 0x227   : > { %1567 = vst.msk [vmem:[#allocation3 + $0x99] sm:$0xff] %vm1551_vm4, %v1544_v53  ;;  %1715 = vrot.lane.b32.xlu1 %v1544_v53, %s2649_s10  ;;  %1626 = vrot.lane.b32.xlu0 %v1544_v53, %s2647_s29 }
 0x228   : > { %v1395_v48 = vmul.f32 %v1373_v56, %v1219_v47 }
 0x22b   : > { %v2636_v49 = vpop.eup %2635 }
 0x22c   : > { %v1698_v2 = vpop.permute.xlu1 %1697  ;;  %v1502_v8 = vpop.permute.xlu2 %1501  ;;  %v1781_v45 = vld [vmem:[#allocation3 + $0x40] sm:$0xff]  ;;  %v1374_v52 = vadd.f32 1.0, %v2636_v49 }
 0x22d   : > { %1758 = vst.msk [vmem:[#allocation3 + $0x4f] sm:$0xff] %vm1751_vm8, %v1698_v2  ;;  %v1545_v3 = vmul.f32 %v1502_v8, %v1391_v1  ;;  %v1611_v4 = vpop.permute.xlu0 %1610  ;;  %2528 = vmatmul.msk.f32.gmra.mxu1 %vm682_vm5, %v1781_v45 }
 0x22e   : > { %1670 = vst.msk [vmem:[#allocation3 + $0x58] sm:$0xff] %vm1662_vm7, %v1611_v4  ;;  %2475 = vmatmul.msk.f32.gmra.mxu3 %vm682_vm5, %v1781_v45  ;;  %2500 = vmatmul.msk.f32.gmra.mxu0 %vm682_vm5, %v1781_v45  ;;  %v1396_v55 = vmul.f32 %v1374_v52, %v1220_v10 }
 0x22f   : > { %1568 = vst.msk [vmem:[#allocation3 + $0xa1] sm:$0xff] %vm1551_vm4, %v1545_v3  ;;  %1717 = vrot.lane.b32.xlu1 %v1545_v3, %s2649_s10  ;;  %1628 = vrot.lane.b32.xlu0 %v1545_v3, %s2647_s29 }
 0x234   : > { %v1700_v12 = vpop.permute.xlu1 %1699  ;;  %v1507_v13 = vpop.permute.xlu2 %1506  ;;  %v1782_v15 = vld [vmem:[#allocation3 + $0x48] sm:$0xff] }
 0x235   : > { %1759 = vst.msk [vmem:[#allocation3 + $0x57] sm:$0xff] %vm1751_vm8, %v1700_v12  ;;  %v1546_v16 = vmul.f32 %v1507_v13, %v1392_v58  ;;  %v1613_v17 = vpop.permute.xlu0 %1612  ;;  %2529 = vmatmul.msk.f32.gmra.mxu1 %vm682_vm5, %v1782_v15 }
 0x236   : > { %1671 = vst.msk [vmem:[#allocation3 + $0x60] sm:$0xff] %vm1662_vm7, %v1613_v17  ;;  %2476 = vmatmul.msk.f32.gmra.mxu3 %vm682_vm5, %v1782_v15  ;;  %2501 = vmatmul.msk.f32.gmra.mxu0 %vm682_vm5, %v1782_v15  ;;  %v3587_v15 = vld [vmem:[%s3713_s4] ss:$0 sm:$0xff] }
 0x237   : > { %1569 = vst.msk [vmem:[#allocation3 + $0xa9] sm:$0xff] %vm1551_vm4, %v1546_v16  ;;  %1630 = vrot.lane.b32.xlu2 %v1546_v16, %s2647_s29  ;;  %1719 = vrot.lane.b32.xlu0 %v1546_v16, %s2649_s10 }
 0x239   : > { %v1999_v5 = vpop.f32.mrf.mxu0 }
 0x23c   : > { %v1702_v44 = vpop.permute.xlu1 %1701  ;;  %v1512_v27 = vpop.permute.xlu2 %1511  ;;  %v1783_v14 = vld [vmem:[#allocation3 + $0x50] sm:$0xff] }
 0x23d   : > { %1760 = vst.msk [vmem:[#allocation3 + $0x5f] sm:$0xff] %vm1751_vm8, %v1702_v44  ;;  %v1547_v42 = vmul.f32 %v1512_v27, %v1393_v25  ;;  %v1615_v63 = vpop.permute.xlu0 %1614  ;;  %2530 = vmatmul.msk.f32.gmra.mxu1 %vm682_vm5, %v1783_v14 }
 0x23e   : > { %1672 = vst.msk [vmem:[#allocation3 + $0x68] sm:$0xff] %vm1662_vm7, %v1615_v63  ;;  %2477 = vmatmul.msk.f32.gmra.mxu3 %vm682_vm5, %v1783_v14  ;;  %2502 = vmatmul.msk.f32.gmra.mxu0 %vm682_vm5, %v1783_v14 }
 0x23f   : > { %1570 = vst.msk [vmem:[#allocation3 + $0xb1] sm:$0xff] %vm1551_vm4, %v1547_v42  ;;  %1721 = vrot.lane.b32.xlu2 %v1547_v42, %s2649_s10  ;;  %1632 = vrot.lane.b32.xlu1 %v1547_v42, %s2647_s29 }
 0x241   : > { %v2002_v38 = vpop.f32.mrf.mxu0 }
 0x244   : > { %v1704_v35 = vpop.permute.xlu1 %1703  ;;  %v1517_v39 = vpop.permute.xlu2 %1516  ;;  %v1784_v37 = vld [vmem:[#allocation3 + $0x58] sm:$0xff] }
 0x245   : > { %1761 = vst.msk [vmem:[#allocation3 + $0x67] sm:$0xff] %vm1751_vm8, %v1704_v35  ;;  %v1548_v46 = vmul.f32 %v1517_v39, %v1394_v33  ;;  %2531 = vmatmul.msk.f32.gmra.mxu1 %vm682_vm5, %v1784_v37 }
 0x246   : > { %2478 = vmatmul.msk.f32.gmra.mxu3 %vm682_vm5, %v1784_v37  ;;  %2503 = vmatmul.msk.f32.gmra.mxu0 %vm682_vm5, %v1784_v37 }
 0x247   : > { %1571 = vst.msk [vmem:[#allocation3 + $0xb9] sm:$0xff] %vm1551_vm4, %v1548_v46  ;;  %1723 = vrot.lane.b32.xlu1 %v1548_v46, %s2649_s10  ;;  %1634 = vrot.lane.b32.xlu0 %v1548_v46, %s2647_s29 }
 0x24c   : > { %v1522_v51 = vpop.permute.xlu2 %1521  ;;  %v1785_v53 = vld [vmem:[#allocation3 + $0x60] sm:$0xff] }
 0x24d   : > { %v1549_v54 = vmul.f32 %v1522_v51, %v1395_v48  ;;  %2532 = vmatmul.msk.f32.gmra.mxu1 %vm682_vm5, %v1785_v53 }
 0x24e   : > { %2479 = vmatmul.msk.f32.gmra.mxu3 %vm682_vm5, %v1785_v53  ;;  %2504 = vmatmul.msk.f32.gmra.mxu0 %vm682_vm5, %v1785_v53 }
 0x24f   : > { %1572 = vst.msk [vmem:[#allocation3 + $0xc1] sm:$0xff] %vm1551_vm4, %v1549_v54  ;;  %1636 = vrot.lane.b32.xlu2 %v1549_v54, %s2647_s29  ;;  %1725 = vrot.lane.b32.xlu0 %v1549_v54, %s2649_s10 }
 0x254   : > { %v1527_v57 = vpop.permute.xlu2 %1526 }
 0x255   : > { %v1550_v36 = vmul.f32 %v1527_v57, %v1396_v55 }
 0x257   : > { %1573 = vst.msk [vmem:[#allocation3 + $0xc9] sm:$0xff] %vm1551_vm4, %v1550_v36  ;;  %1727 = vrot.lane.b32.xlu2 %v1550_v36, %s2649_s10  ;;  %1638 = vrot.lane.b32.xlu1 %v1550_v36, %s2647_s29 }
 0x271   : > { %v1706_v50 = vpop.permute.xlu1 %1705  ;;  %v1617_v40 = vpop.permute.xlu0 %1616 }
 0x272   : > { %1673 = vst.msk [vmem:[#allocation3 + $0x70] sm:$0xff] %vm1662_vm7, %v1617_v40 }
 0x273   : > { %1762 = vst.msk [vmem:[#allocation3 + $0x6f] sm:$0xff] %vm1751_vm8, %v1706_v50 }
 0x279   : > { %v1708_v59 = vpop.permute.xlu1 %1707  ;;  %v1619_v60 = vpop.permute.xlu0 %1618 }
 0x27a   : > { %1674 = vst.msk [vmem:[#allocation3 + $0x78] sm:$0xff] %vm1662_vm7, %v1619_v60  ;;  %v1786_v61 = vld [vmem:[#allocation3 + $0x68] sm:$0xff] }
 0x27b   : > { %1763 = vst.msk [vmem:[#allocation3 + $0x77] sm:$0xff] %vm1751_vm8, %v1708_v59  ;;  %2480 = vmatmul.msk.f32.gmra.mxu3 %vm682_vm5, %v1786_v61  ;;  %2505 = vmatmul.msk.f32.gmra.mxu0 %vm682_vm5, %v1786_v61  ;;  %v2005_v14 = vpop.f32.mrf.mxu0 }
 0x27c   : > { %2533 = vmatmul.msk.f32.gmra.mxu1 %vm682_vm5, %v1786_v61 }
 0x281   : > { %v1710_v62 = vpop.permute.xlu1 %1709  ;;  %v1621_v1 = vpop.permute.xlu0 %1620 }
 0x282   : > { %1675 = vst.msk [vmem:[#allocation3 + $0x80] sm:$0xff] %vm1662_vm7, %v1621_v1  ;;  %v1787_v0 = vld [vmem:[#allocation3 + $0x70] sm:$0xff] }
 0x283   : > { %1764 = vst.msk [vmem:[#allocation3 + $0x7f] sm:$0xff] %vm1751_vm8, %v1710_v62  ;;  %2481 = vmatmul.msk.f32.gmra.mxu3 %vm682_vm5, %v1787_v0  ;;  %2506 = vmatmul.msk.f32.gmra.mxu0 %vm682_vm5, %v1787_v0 }
 0x284   : > { %2534 = vmatmul.msk.f32.gmra.mxu1 %vm682_vm5, %v1787_v0 }
 0x285   : > { %v2008_v35 = vpop.f32.mrf.mxu0 }
 0x289   : > { %v1712_v2 = vpop.permute.xlu1 %1711  ;;  %v1623_v8 = vpop.permute.xlu0 %1622 }
 0x28a   : > { %1676 = vst.msk [vmem:[#allocation3 + $0x88] sm:$0xff] %vm1662_vm7, %v1623_v8  ;;  %v1788_v45 = vld [vmem:[#allocation3 + $0x78] sm:$0xff] }
 0x28b   : > { %1765 = vst.msk [vmem:[#allocation3 + $0x87] sm:$0xff] %vm1751_vm8, %v1712_v2  ;;  %2482 = vmatmul.msk.f32.gmra.mxu3 %vm682_vm5, %v1788_v45  ;;  %2507 = vmatmul.msk.f32.gmra.mxu0 %vm682_vm5, %v1788_v45  ;;  %v1907_v43 = vpop.f32.mrf.mxu3 }
 0x28c   : > { %2535 = vmatmul.msk.f32.gmra.mxu1 %vm682_vm5, %v1788_v45  ;;  %v2000_v58 = vadd.f32 %v1999_v5, %v1907_v43  ;;  %v2084_v5 = vld [vmem:[#allocation3 + $0xd0] sm:$0xff] }
 0x28d   : > { %v2011_v53 = vpop.f32.mrf.mxu0 }
 0x291   : > { %v1714_v3 = vpop.permute.xlu1 %1713  ;;  %v1631_v4 = vpop.permute.xlu2 %1630 }
 0x292   : > { %1680 = vst.msk [vmem:[#allocation3 + $0xa8] sm:$0xff] %vm1662_vm7, %v1631_v4  ;;  %v1625_v29 = vpop.permute.xlu0 %1624  ;;  %v1789_v28 = vld [vmem:[#allocation3 + $0x80] sm:$0xff] }
 0x293   : > { %1677 = vst.msk [vmem:[#allocation3 + $0x90] sm:$0xff] %vm1662_vm7, %v1625_v29  ;;  %2483 = vmatmul.msk.f32.gmra.mxu3 %vm682_vm5, %v1789_v28  ;;  %2508 = vmatmul.msk.f32.gmra.mxu0 %vm682_vm5, %v1789_v28  ;;  %v1910_v11 = vpop.f32.mrf.mxu3 }
 0x294   : > { %1766 = vst.msk [vmem:[#allocation3 + $0x8f] sm:$0xff] %vm1751_vm8, %v1714_v3  ;;  %2536 = vmatmul.msk.f32.gmra.mxu1 %vm682_vm5, %v1789_v28  ;;  %v2003_v20 = vadd.f32 %v2002_v38, %v1910_v11  ;;  %v319_v3 = vld [vmem:[%s2702_s27] sm:$0xff]  ;;  %v348_v28 = vld [vmem:[%s2702_s27 + $0xe8] sm:$0xff]  ;;  %v2086_v38 = vld [vmem:[#allocation3 + $0xe0] sm:$0xff] }
 0x295   : > { %379 = vrot.lane.b32.xlu0 %v319_v3, %s2646_s28  ;;  %437 = vrot.lane.b32.xlu1 %v348_v28, %s2646_s28 }
 0x299   : > { %v1716_v7 = vpop.permute.xlu1 %1715  ;;  %v1722_v12 = vpop.permute.xlu2 %1721 }
 0x29a   : > { %v1627_v9 = vpop.permute.xlu0 %1626 }
 0x29b   : > { %1678 = vst.msk [vmem:[#allocation3 + $0x98] sm:$0xff] %vm1662_vm7, %v1627_v9  ;;  %v1790_v41 = vld [vmem:[#allocation3 + $0x88] sm:$0xff]  ;;  %v2014_v40 = vpop.f32.mrf.mxu0 }
 0x29c   : > { %1767 = vst.msk [vmem:[#allocation3 + $0x97] sm:$0xff] %vm1751_vm8, %v1716_v7  ;;  %2484 = vmatmul.msk.f32.gmra.mxu3 %vm682_vm5, %v1790_v41  ;;  %2509 = vmatmul.msk.f32.gmra.mxu0 %vm682_vm5, %v1790_v41  ;;  %v2085_v7 = vld [vmem:[#allocation3 + $0xd8] sm:$0xff] }
 0x29d   : > { %2537 = vmatmul.msk.f32.gmra.mxu1 %vm682_vm5, %v1790_v41  ;;  %618 = vrot.lane.b32.xlu0 %v529_v23, %s2647_s29 }
 0x2a1   : > { %v1718_v13 = vpop.permute.xlu1 %1717  ;;  %v1913_v18 = vpop.f32.mrf.mxu3 }
 0x2a2   : > { %v1629_v16 = vpop.permute.xlu0 %1628  ;;  %v2183_v17 = vpop.f32.mrf.mxu1  ;;  %v2006_v63 = vadd.f32 %v2005_v14, %v1913_v18 }
 0x2a3   : > { %1679 = vst.msk [vmem:[#allocation3 + $0xa0] sm:$0xff] %vm1662_vm7, %v1629_v16  ;;  %v2249_v6 = vadd.f32 %v2183_v17, %v2000_v58  ;;  %v1791_v19 = vld [vmem:[#allocation3 + $0x90] sm:$0xff]  ;;  %v2017_v4 = vpop.f32.mrf.mxu0 }
 0x2a4   : > { %1768 = vst.msk [vmem:[#allocation3 + $0x9f] sm:$0xff] %vm1751_vm8, %v1718_v13  ;;  %2485 = vmatmul.msk.f32.gmra.mxu3 %vm682_vm5, %v1791_v19  ;;  %2510 = vmatmul.msk.f32.gmra.mxu0 %vm682_vm5, %v1791_v19  ;;  %v500_v16 = vld [vmem:[%s2702_s27 + $0x1] sm:$0xff] }
 0x2a5   : > { %v2274_v22 = vadd.f32 %v3587_v15, %v2249_v6  ;;  %2538 = vmatmul.msk.f32.gmra.mxu1 %vm682_vm5, %v1791_v19  ;;  %560 = vrot.lane.b32.xlu2 %v500_v16, %s2647_s29 }
 0x2a7   : > { %2296 = vst.msk [vmem:[%s3596_s9 + $0x20] sm:$0xff] %vm287_vm0, %v2274_v22 }
 0x2a9   : > { %v1637_v24 = vpop.permute.xlu2 %1636  ;;  %v1916_v30 = vpop.f32.mrf.mxu3 }
 0x2aa   : > { %1683 = vst.msk [vmem:[#allocation3 + $0xc0] sm:$0xff] %vm1662_vm7, %v1637_v24  ;;  %v1720_v25 = vpop.permute.xlu0 %1719  ;;  %v2186_v26 = vpop.f32.mrf.mxu1  ;;  %v2009_v39 = vadd.f32 %v2008_v35, %v1916_v30 }
 0x2ab   : > { %1769 = vst.msk [vmem:[#allocation3 + $0xa7] sm:$0xff] %vm1751_vm8, %v1720_v25  ;;  %v2250_v44 = vadd.f32 %v2186_v26, %v2003_v20  ;;  %v1792_v27 = vld [vmem:[#allocation3 + $0x98] sm:$0xff]  ;;  %v2020_v43 = vpop.f32.mrf.mxu0 }
 0x2ac   : > { %2486 = vmatmul.msk.f32.gmra.mxu3 %vm682_vm5, %v1792_v27  ;;  %2511 = vmatmul.msk.f32.gmra.mxu0 %vm682_vm5, %v1792_v27 }
 0x2ad   : > { %v2275_v42 = vadd.f32 %v3587_v15, %v2250_v44  ;;  %2539 = vmatmul.msk.f32.gmra.mxu1 %vm682_vm5, %v1792_v27 }
 0x2af   : > { %2297 = vst.msk [vmem:[%s3596_s9 + $0x28] sm:$0xff] %vm287_vm0, %v2275_v42 }
 0x2b1   : > { %v1633_v21 = vpop.permute.xlu1 %1632  ;;  %v1919_v49 = vpop.f32.mrf.mxu3 }
 0x2b2   : > { %1681 = vst.msk [vmem:[#allocation3 + $0xb0] sm:$0xff] %vm1662_vm7, %v1633_v21  ;;  %v2189_v31 = vpop.f32.mrf.mxu1  ;;  %v1793_v32 = vld [vmem:[#allocation3 + $0xa0] sm:$0xff]  ;;  %v2012_v54 = vadd.f32 %v2011_v53, %v1919_v49  ;;  %v1728_v61 = vpop.permute.xlu2 %1727 }
 0x2b3   : > { %1770 = vst.msk [vmem:[#allocation3 + $0xaf] sm:$0xff] %vm1751_vm8, %v1722_v12  ;;  %v2251_v33 = vadd.f32 %v2189_v31, %v2006_v63  ;;  %v2023_v41 = vpop.f32.mrf.mxu0 }
 0x2b4   : > { %2487 = vmatmul.msk.f32.gmra.mxu3 %vm682_vm5, %v1793_v32  ;;  %2512 = vmatmul.msk.f32.gmra.mxu0 %vm682_vm5, %v1793_v32 }
 0x2b5   : > { %v2276_v34 = vadd.f32 %v3587_v15, %v2251_v33  ;;  %2540 = vmatmul.msk.f32.gmra.mxu1 %vm682_vm5, %v1793_v32 }
 0x2b7   : > { %2298 = vst.msk [vmem:[%s3596_s9 + $0x30] sm:$0xff] %vm287_vm0, %v2276_v34 }
 0x2b9   : > { %v1724_v37 = vpop.permute.xlu1 %1723  ;;  %v1635_v46 = vpop.permute.xlu0 %1634 }
 0x2ba   : > { %v2192_v56 = vpop.f32.mrf.mxu1  ;;  %v1794_v47 = vld [vmem:[#allocation3 + $0xa8] sm:$0xff]  ;;  %1682 = vst.msk [vmem:[#allocation3 + $0xb8] sm:$0xff] %vm1662_vm7, %v1635_v46  ;;  %v1922_v50 = vpop.f32.mrf.mxu3 }
 0x2bb   : > { %v2252_v48 = vadd.f32 %v2192_v56, %v2009_v39  ;;  %1771 = vst.msk [vmem:[#allocation3 + $0xb7] sm:$0xff] %vm1751_vm8, %v1724_v37  ;;  %v2015_v59 = vadd.f32 %v2014_v40, %v1922_v50  ;;  %v2026_v17 = vpop.f32.mrf.mxu0 }
 0x2bc   : > { %2488 = vmatmul.msk.f32.gmra.mxu3 %vm682_vm5, %v1794_v47  ;;  %2513 = vmatmul.msk.f32.gmra.mxu0 %vm682_vm5, %v1794_v47 }
 0x2bd   : > { %v2277_v51 = vadd.f32 %v3587_v15, %v2252_v48  ;;  %2541 = vmatmul.msk.f32.gmra.mxu1 %vm682_vm5, %v1794_v47 }
 0x2bf   : > { %2299 = vst.msk [vmem:[%s3596_s9 + $0x38] sm:$0xff] %vm287_vm0, %v2277_v51 }
 0x2c1   : > { %v1726_v52 = vpop.permute.xlu0 %1725 }
 0x2c2   : > { %v2195_v10 = vpop.f32.mrf.mxu1  ;;  %1772 = vst.msk [vmem:[#allocation3 + $0xbf] sm:$0xff] %vm1751_vm8, %v1726_v52  ;;  %v1795_v57 = vld [vmem:[#allocation3 + $0xb0] sm:$0xff]  ;;  %v1925_v29 = vpop.f32.mrf.mxu3 }
 0x2c3   : > { %v2253_v55 = vadd.f32 %v2195_v10, %v2012_v54  ;;  %2514 = vmatmul.msk.f32.vlgmr.msra.gmra.mxu2 %vm682_vm5, %v1795_v57  ;;  %v2018_v58 = vadd.f32 %v2017_v4, %v1925_v29  ;;  %v2029_v25 = vpop.f32.mrf.mxu0 }
 0x2c4   : > { %2489 = vmatmul.msk.f32.gmra.mxu3 %vm682_vm5, %v1795_v57 }
 0x2c5   : > { %v2278_v36 = vadd.f32 %v3587_v15, %v2253_v55  ;;  %2542 = vmatmul.msk.f32.gmra.mxu1 %vm682_vm5, %v1795_v57 }
 0x2c7   : > { %2300 = vst.msk [vmem:[%s3596_s9 + $0x40] sm:$0xff] %vm287_vm0, %v2278_v36 }
 0x2c9   : > { %v1639_v60 = vpop.permute.xlu1 %1638  ;;  %v1808_v1 = vld [vmem:[#allocation3 + $0xb8] sm:$0xff] }
 0x2ca   : > { %1684 = vst.msk [vmem:[#allocation3 + $0xc8] sm:$0xff] %vm1662_vm7, %v1639_v60  ;;  %v2198_v62 = vpop.f32.mrf.mxu1  ;;  %v1928_v9 = vpop.f32.mrf.mxu3 }
 0x2cb   : > { %1773 = vst.msk [vmem:[#allocation3 + $0xc7] sm:$0xff] %vm1751_vm8, %v1728_v61  ;;  %v2254_v0 = vadd.f32 %v2198_v62, %v2015_v59  ;;  %v2021_v22 = vadd.f32 %v2020_v43, %v1928_v9  ;;  %v2032_v21 = vpop.f32.mrf.mxu0 }
 0x2cc   : > { %2490 = vmatmul.msk.f32.gmra.mxu3 %vm682_vm5, %v1808_v1 }
 0x2cd   : > { %v2279_v2 = vadd.f32 %v3587_v15, %v2254_v0  ;;  %2543 = vmatmul.msk.f32.gmra.mxu1 %vm682_vm5, %v1808_v1 }
 0x2cf   : > { %2301 = vst.msk [vmem:[%s3596_s9 + $0x48] sm:$0xff] %vm287_vm0, %v2279_v2 }
 0x2d2   : > { %v1809_v8 = vld [vmem:[#allocation3 + $0xc0] sm:$0xff]  ;;  %v1810_v45 = vld [vmem:[#allocation3 + $0xc8] sm:$0xff]  ;;  %v1931_v11 = vpop.f32.mrf.mxu3 }
 0x2d3   : > { %v2024_v44 = vadd.f32 %v2023_v41, %v1931_v11 }
 0x2d4   : > { %2491 = vmatmul.msk.f32.gmra.mxu3 %vm682_vm5, %v1809_v8 }
 0x2d5   : > { %2544 = vmatmul.msk.f32.gmra.mxu1 %vm682_vm5, %v1809_v8 }
 0x2dc   : > { %2492 = vmatmul.msk.f32.gmra.mxu3 %vm682_vm5, %v1810_v45 }
 0x2dd   : > { %2545 = vmatmul.msk.f32.gmra.mxu1 %vm682_vm5, %v1810_v45 }
 0x2e5   : > { %2546 = vmatmul.msk.f32.gmra.mxu1 %vm682_vm5, %v2084_v5 }
 0x2ed   : > { %2547 = vmatmul.msk.f32.gmra.mxu1 %vm682_vm5, %v2085_v7 }
 0x2f5   : > { %2548 = vmatmul.msk.f32.gmra.mxu1 %vm682_vm5, %v2086_v38 }
 0x2f8   : > { %v2035_v35 = vpop.f32.mrf.mxu0 }
 0x2f9   : > { %v2201_v12 = vpop.f32.mrf.mxu1 }
 0x2fa   : > { %v2255_v13 = vadd.f32 %v2201_v12, %v2018_v58 }
 0x2fc   : > { %v2280_v6 = vadd.f32 %v3587_v15, %v2255_v13 }
 0x2fe   : > { %2302 = vst.msk [vmem:[%s3596_s9 + $0x50] sm:$0xff] %vm287_vm0, %v2280_v6  ;;  %v1934_v19 = vpop.f32.mrf.mxu3 }
 0x2ff   : > { %v2027_v30 = vadd.f32 %v2026_v17, %v1934_v19 }
 0x300   : > { %v2038_v49 = vpop.f32.mrf.mxu0 }
 0x301   : > { %v2204_v18 = vpop.f32.mrf.mxu1 }
 0x302   : > { %v2256_v20 = vadd.f32 %v2204_v18, %v2021_v22  ;;  %v561_v18 = vpop.permute.xlu2 %560 }
 0x304   : > { %v2281_v24 = vadd.f32 %v3587_v15, %v2256_v20 }
 0x306   : > { %2303 = vst.msk [vmem:[%s3596_s9 + $0x58] sm:$0xff] %vm287_vm0, %v2281_v24  ;;  %v1937_v26 = vpop.f32.mrf.mxu3 }
 0x307   : > { %v2030_v39 = vadd.f32 %v2029_v25, %v1937_v26  ;;  %v380_v58 = vpop.permute.xlu0 %379  ;;  %v438_v22 = vpop.permute.xlu1 %437 }
 0x308   : > { %v2041_v36 = vpop.f32.mrf.mxu0 }
 0x309   : > { %v2207_v27 = vpop.f32.mrf.mxu1 }
 0x30a   : > { %v2257_v14 = vadd.f32 %v2207_v27, %v2024_v44 }
 0x30c   : > { %v2282_v42 = vadd.f32 %v3587_v15, %v2257_v14 }
 0x30e   : > { %2304 = vst.msk [vmem:[%s3596_s9 + $0x60] sm:$0xff] %vm287_vm0, %v2282_v42  ;;  %v1940_v63 = vpop.f32.mrf.mxu3 }
 0x30f   : > { %v2033_v48 = vadd.f32 %v2032_v21, %v1940_v63  ;;  %v619_v20 = vpop.permute.xlu0 %618 }
 0x310   : > { %v2044_v1 = vpop.f32.mrf.mxu0 }
 0x311   : > { %v2210_v31 = vpop.f32.mrf.mxu1 }
 0x312   : > { %v2258_v32 = vadd.f32 %v2210_v31, %v2027_v30 }
 0x314   : > { %v2283_v33 = vadd.f32 %v3587_v15, %v2258_v32 }
 0x316   : > { %2305 = vst.msk [vmem:[%s3596_s9 + $0x68] sm:$0xff] %vm287_vm0, %v2283_v33  ;;  %v1943_v34 = vpop.f32.mrf.mxu3 }
 0x317   : > { %v2036_v10 = vadd.f32 %v2035_v35, %v1943_v34 }
 0x319   : > { %v2047_v4 = vpop.f32.mrf.mxu0 }
 0x31a   : > { %v2213_v37 = vpop.f32.mrf.mxu1 }
 0x31b   : > { %v2259_v46 = vadd.f32 %v2213_v37, %v2030_v39 }
 0x31d   : > { %v2284_v56 = vadd.f32 %v3587_v15, %v2259_v46 }
 0x31f   : > { %2306 = vst.msk [vmem:[%s3596_s9 + $0x70] sm:$0xff] %vm287_vm0, %v2284_v56  ;;  %v1946_v47 = vpop.f32.mrf.mxu3 }
 0x320   : > { %v2039_v40 = vadd.f32 %v2038_v49, %v1946_v47 }
 0x321   : > { %v2050_v9 = vpop.f32.mrf.mxu0 }
 0x322   : > { %v2216_v51 = vpop.f32.mrf.mxu1 }
 0x323   : > { %v2260_v53 = vadd.f32 %v2216_v51, %v2033_v48 }
 0x325   : > { %v2285_v54 = vadd.f32 %v3587_v15, %v2260_v53 }
 0x327   : > { %2307 = vst.msk [vmem:[%s3596_s9 + $0x78] sm:$0xff] %vm287_vm0, %v2285_v54  ;;  %v1949_v52 = vpop.f32.mrf.mxu3 }
 0x328   : > { %v2042_v0 = vadd.f32 %v2041_v36, %v1949_v52 }
 0x329   : > { %v2053_v6 = vpop.f32.mrf.mxu0 }
 0x32a   : > { %v2219_v55 = vpop.f32.mrf.mxu1 }
 0x32b   : > { %v2261_v57 = vadd.f32 %v2219_v55, %v2036_v10 }
 0x32d   : > { %v2286_v50 = vadd.f32 %v3587_v15, %v2261_v57 }
 0x32f   : > { %2308 = vst.msk [vmem:[%s3596_s9 + $0x80] sm:$0xff] %vm287_vm0, %v2286_v50  ;;  %v1952_v59 = vpop.f32.mrf.mxu3 }
 0x330   : > { %v2045_v29 = vadd.f32 %v2044_v1, %v1952_v59 }
 0x331   : > { %v2056_v14 = vpop.f32.mrf.mxu0 }
 0x332   : > { %v2222_v60 = vpop.f32.mrf.mxu1 }
 0x333   : > { %v2262_v61 = vadd.f32 %v2222_v60, %v2039_v40 }
 0x335   : > { %v2287_v62 = vadd.f32 %v3587_v15, %v2262_v61 }
 0x337   : > { %2309 = vst.msk [vmem:[%s3596_s9 + $0x88] sm:$0xff] %vm287_vm0, %v2287_v62  ;;  %v1955_v45 = vpop.f32.mrf.mxu3 }
 0x338   : > { %v2048_v7 = vadd.f32 %v2047_v4, %v1955_v45 }
 0x339   : > { %v2059_v32 = vpop.f32.mrf.mxu0 }
 0x33a   : > { %v2225_v2 = vpop.f32.mrf.mxu1 }
 0x33b   : > { %v2263_v8 = vadd.f32 %v2225_v2, %v2042_v0 }
 0x33d   : > { %v2288_v3 = vadd.f32 %v3587_v15, %v2263_v8 }
 0x33f   : > { %2310 = vst.msk [vmem:[%s3596_s9 + $0x90] sm:$0xff] %vm287_vm0, %v2288_v3  ;;  %v1958_v43 = vpop.f32.mrf.mxu3 }
 0x340   : > { %v2051_v13 = vadd.f32 %v2050_v9, %v1958_v43 }
 0x342   : > { %v2228_v28 = vpop.f32.mrf.mxu1 }
 0x343   : > { %v2264_v23 = vadd.f32 %v2228_v28, %v2045_v29 }
 0x345   : > { %v2289_v5 = vadd.f32 %v3587_v15, %v2264_v23 }
 0x346   : > { %v2062_v46 = vpop.f32.mrf.mxu2 }
 0x347   : > { %2311 = vst.msk [vmem:[%s3596_s9 + $0x98] sm:$0xff] %vm287_vm0, %v2289_v5  ;;  %v1961_v12 = vpop.f32.mrf.mxu3 }
 0x348   : > { %v2054_v24 = vadd.f32 %v2053_v6, %v1961_v12 }
 0x34a   : > { %v2231_v41 = vpop.f32.mrf.mxu1 }
 0x34b   : > { %v2265_v38 = vadd.f32 %v2231_v41, %v2048_v7 }
 0x34d   : > { %v2290_v11 = vadd.f32 %v3587_v15, %v2265_v38 }
 0x34f   : > { %2312 = vst.msk [vmem:[%s3596_s9 + $0xa0] sm:$0xff] %vm287_vm0, %v2290_v11  ;;  %v1964_v25 = vpop.f32.mrf.mxu3 }
 0x350   : > { %v2057_v42 = vadd.f32 %v2056_v14, %v1964_v25 }
 0x352   : > { %v2234_v16 = vpop.f32.mrf.mxu1 }
 0x353   : > { %v2266_v17 = vadd.f32 %v2234_v16, %v2051_v13 }
 0x355   : > { %v2291_v19 = vadd.f32 %v3587_v15, %v2266_v17 }
 0x357   : > { %2313 = vst.msk [vmem:[%s3596_s9 + $0xa8] sm:$0xff] %vm287_vm0, %v2291_v19  ;;  %v1967_v30 = vpop.f32.mrf.mxu3 }
 0x358   : > { %v2060_v33 = vadd.f32 %v2059_v32, %v1967_v30 }
 0x35a   : > { %v2237_v26 = vpop.f32.mrf.mxu1 }
 0x35b   : > { %v2267_v44 = vadd.f32 %v2237_v26, %v2054_v24 }
 0x35d   : > { %v2292_v27 = vadd.f32 %v3587_v15, %v2267_v44 }
 0x35f   : > { %2314 = vst.msk [vmem:[%s3596_s9 + $0xb0] sm:$0xff] %vm287_vm0, %v2292_v27  ;;  %v1970_v37 = vpop.f32.mrf.mxu3 }
 0x360   : > { %v2063_v56 = vadd.f32 %v2062_v46, %v1970_v37 }
 0x362   : > { %v2240_v63 = vpop.f32.mrf.mxu1 }
 0x363   : > { %v2268_v21 = vadd.f32 %v2240_v63, %v2057_v42 }
 0x365   : > { %v2293_v31 = vadd.f32 %v3587_v15, %v2268_v21 }
 0x367   : > { %2315 = vst.msk [vmem:[%s3596_s9 + $0xb8] sm:$0xff] %vm287_vm0, %v2293_v31 }
 0x36a   : > { %v2243_v34 = vpop.f32.mrf.mxu1 }
 0x36b   : > { %v2269_v35 = vadd.f32 %v2243_v34, %v2060_v33 }
 0x36d   : > { %v2294_v39 = vadd.f32 %v3587_v15, %v2269_v35 }
 0x36f   : > { %2316 = vst.msk [vmem:[%s3596_s9 + $0xc0] sm:$0xff] %vm287_vm0, %v2294_v39 }
 0x372   : > { %v2246_v47 = vpop.f32.mrf.mxu1 }
 0x373   : > { %v2270_v48 = vadd.f32 %v2246_v47, %v2063_v56 }
 0x375   : > { %v2295_v49 = vadd.f32 %v3587_v15, %v2270_v48 }
 0x377   : > { %2317 = vst.msk [vmem:[%s3596_s9 + $0xc8] sm:$0xff] %vm287_vm0, %v2295_v49 }
 0x378 PF: > { %s16_s21 = sadd.s32 1, %s2644_s21  }
 0x379   : > { %p13_p4 = scmp.ge.s32.totalorder %s16_s21, 4  }
 0x37b   :  { %15 = sbr.rel (!%p13_p4) target bundleno = 1 (0x1), region = 78 }

</bundles_post_ra>
